<compile_context>
chip_gen: v5e
topology: v5e:2x2
jax: 0.10.0
libtpu: 0.0.40
codegen_flags: <defaults>
</compile_context>

<pallas_src>
import jax
import jax.numpy as jnp
from jax.experimental import pallas as pl
from jax.experimental.pallas import tpu as pltpu

# ---- model hyper-parameters (small, consistent with the module) ------------
INPUT_DIM = 4       # input_dim
HIDDEN = 32         # hidden_size
CTX = 8             # context_size
NQ = 3              # num_quantiles
PRED = 4            # pred_long
HIST = 8            # hist_long

T_ALL = HIST + PRED           # timesteps that go through linear_encoder
G4 = 4 * HIDDEN               # LSTM gate width (i,f,g,o)
CTX_OUT = CTX * (PRED + 1)    # global_mlp output width
OUT_W = PRED * NQ             # final output width
IN_W = T_ALL * INPUT_DIM + HIST  # packed input width


# ---- kernel ----------------------------------------------------------------
def mq_rnn_kernel(
    x_ref,                                   # [TILE_B, IN_W] packed activations
    w_enc_ref, b_enc_ref,                    # fused encoder (block-diag)
    w_gih_ref, w_giy_ref, b_g_ref,           # fused LSTM input-side gates
    w_hh_ref,                                # LSTM recurrent weight
    wg_h_ref, wg_x_ref, bg_ref,              # global_mlp (split over concat)
    wl_ctx_ref, wl_x_ref, bl_ref,            # fused local_mlp over all k
    out_ref,                                 # [TILE_B, OUT_W]
):
    f32 = jnp.float32
    x = x_ref[...]
    x_hp = x[:, : T_ALL * INPUT_DIM]                 # hist + pred raw features
    y_hist = x[:, T_ALL * INPUT_DIM:]                # [TILE_B, HIST]

    # tanh(linear_encoder(.)) for every hist+pred timestep in one matmul.
    feats = jnp.tanh(
        jnp.dot(x_hp, w_enc_ref[...], preferred_element_type=f32)
        + b_enc_ref[...])                            # [TILE_B, T_ALL*CTX]
    hist_feats = feats[:, : HIST * CTX]              # [TILE_B, HIST*CTX]
    pred_feats = feats[:, HIST * CTX:]               # [TILE_B, PRED*CTX]

    # Input-side LSTM gate pre-activations for all timesteps at once.
    gates_x = (jnp.dot(hist_feats, w_gih_ref[...], preferred_element_type=f32)
               + jnp.dot(y_hist, w_giy_ref[...], preferred_element_type=f32)
               + b_g_ref[...])                       # [TILE_B, HIST*4H]

    tb = x.shape[0]
    h = jnp.zeros((tb, HIDDEN), f32)
    c = jnp.zeros((tb, HIDDEN), f32)
    w_hh = w_hh_ref[...]

    # Unrolled recurrence (HIST is small & static) — only h @ W_hh per step.
    for t in range(HIST):
        g = gates_x[:, t * G4:(t + 1) * G4] + jnp.dot(
            h, w_hh, preferred_element_type=f32)
        i_g = jax.nn.sigmoid(g[:, 0:HIDDEN])
        f_g = jax.nn.sigmoid(g[:, HIDDEN:2 * HIDDEN])
        c_g = jnp.tanh(g[:, 2 * HIDDEN:3 * HIDDEN])
        o_g = jax.nn.sigmoid(g[:, 3 * HIDDEN:4 * HIDDEN])
        c = f_g * c + i_g * c_g
        h = o_g * jnp.tanh(c)

    # Decoder: global_mlp(cat(ht, x_future_flat)) as split-weight matmuls.
    ctx = jax.nn.sigmoid(
        jnp.dot(h, wg_h_ref[...], preferred_element_type=f32)
        + jnp.dot(pred_feats, wg_x_ref[...], preferred_element_type=f32)
        + bg_ref[...])                               # [TILE_B, CTX*(PRED+1)]

    # All pred_long local_mlp calls fused into 2 block-structured matmuls.
    out = (jnp.dot(ctx, wl_ctx_ref[...], preferred_element_type=f32)
           + jnp.dot(pred_feats, wl_x_ref[...], preferred_element_type=f32)
           + bl_ref[...])                            # [TILE_B, PRED*NQ]
    out_ref[...] = out


# ---- fused-weight construction (pure layout, done once in the wrapper) -----
def _build_fused_weights(p):
    f32 = jnp.float32
    eye_tall = jnp.eye(T_ALL, dtype=f32)
    eye_hist = jnp.eye(HIST, dtype=f32)
    eye_pred = jnp.eye(PRED, dtype=f32)

    # Encoder applied block-diagonally to every hist+pred timestep.
    w_enc_all = jnp.kron(eye_tall, p["w_enc"])                 # [T_ALL*D, T_ALL*C]
    b_enc_all = jnp.tile(p["b_enc"], (1, T_ALL))               # [1, T_ALL*C]

    # LSTM input-side gates: W_ih split into x-feature rows and the y row.
    w_ih_x = p["w_ih"][:CTX, :]                                # [C, 4H]
    w_ih_y = p["w_ih"][CTX:CTX + 1, :]                         # [1, 4H]
    w_gih = jnp.kron(eye_hist, w_ih_x)                         # [HIST*C, HIST*4H]
    w_giy = jnp.kron(eye_hist, w_ih_y)                         # [HIST,   HIST*4H]
    b_g = jnp.tile(p["b_ih"] + p["b_hh"], (1, HIST))           # [1, HIST*4H]

    # global_mlp split over cat([ht, x_future_flat]).
    wg_h = p["w_glob"][:HIDDEN, :]                             # [H, CTX_OUT]
    wg_x = p["w_glob"][HIDDEN:, :]                             # [PRED*C, CTX_OUT]

    # local_mlp fused over all k: rows of W_loc^T are [ck | ca | xk] blocks.
    wl_ck = p["w_loc"][0:CTX, :]                               # [C, Q]
    wl_ca = p["w_loc"][CTX:2 * CTX, :]                         # [C, Q]
    wl_xk = p["w_loc"][2 * CTX:3 * CTX, :]                     # [C, Q]
    wl_ctx = jnp.concatenate(
        [jnp.kron(eye_pred, wl_ck),                            # ck -> step k cols
         jnp.tile(wl_ca, (1, PRED))], axis=0)                  # ca -> every step
    wl_x = jnp.kron(eye_pred, wl_xk)                           # [PRED*C, PRED*Q]
    bl = jnp.tile(p["b_loc"], (1, PRED))                       # [1, PRED*Q]

    return dict(w_enc_all=w_enc_all, b_enc_all=b_enc_all,
                w_gih=w_gih, w_giy=w_giy, b_g=b_g,
                wg_h=wg_h, wg_x=wg_x,
                wl_ctx=wl_ctx, wl_x=wl_x, bl=bl)


# ---- wrapper ---------------------------------------------------------------
def mq_rnn_forward(x_seq_hist, y_seq_hist, x_seq_pred, params, tile_b=8):
    f32 = jnp.float32
    B = x_seq_hist.shape[0]
    fw = _build_fused_weights(params)

    # Pack all activations into one lane-dense slab: [x_hist | x_pred | y_hist]
    x_in = jnp.concatenate(
        [x_seq_hist.reshape(B, HIST * INPUT_DIM),
         x_seq_pred.reshape(B, PRED * INPUT_DIM),
         y_seq_hist.reshape(B, HIST)], axis=1).astype(f32)

    bp = pl.cdiv(B, tile_b) * tile_b
    if bp != B:
        x_in = jnp.pad(x_in, ((0, bp - B), (0, 0)))

    weights = (fw["w_enc_all"], fw["b_enc_all"],
               fw["w_gih"], fw["w_giy"], fw["b_g"],
               params["w_hh"],
               fw["wg_h"], fw["wg_x"], params["b_glob"],
               fw["wl_ctx"], fw["wl_x"], fw["bl"])

    act_map = lambda i: (i, 0)
    w_map = lambda i: (0, 0)   # weights stay VMEM-resident across grid steps

    in_specs = [pl.BlockSpec((tile_b, IN_W), act_map)] + [
        pl.BlockSpec(w.shape, w_map) for w in weights]

    flops_per_row = 2 * (T_ALL * INPUT_DIM * T_ALL * CTX
                         + HIST * CTX * HIST * G4
                         + HIST * HIST * G4
                         + HIST * HIDDEN * G4
                         + (HIDDEN + PRED * CTX) * CTX_OUT
                         + (CTX_OUT + PRED * CTX) * OUT_W)
    trans_per_row = T_ALL * CTX + HIST * 5 * HIDDEN + CTX_OUT
    w_bytes = sum(int(w.size) * 4 for w in weights)
    cost = pl.CostEstimate(
        flops=int(bp * flops_per_row),
        transcendentals=int(bp * trans_per_row),
        bytes_accessed=int(bp * (IN_W + OUT_W) * 4 + w_bytes),
    )

    out = pl.pallas_call(
        mq_rnn_kernel,
        out_shape=jax.ShapeDtypeStruct((bp, OUT_W), f32),
        grid=(bp // tile_b,),
        in_specs=in_specs,
        out_specs=pl.BlockSpec((tile_b, OUT_W), act_map),
        compiler_params=pltpu.CompilerParams(
            dimension_semantics=("parallel",)),
        cost_estimate=cost,
    )(x_in, *weights)
    return out[:B]


# ---- parameters ------------------------------------------------------------
def init_params(key):
    """Weights stored transposed as [in_features, out_features].
    Encoder / global / local ~ N(0, 0.02), biases 0 (matches init_weights);
    LSTM uses PyTorch's default uniform(-1/sqrt(H), 1/sqrt(H))."""
    f32 = jnp.float32
    std = 0.02
    k = 1.0 / jnp.sqrt(jnp.asarray(HIDDEN, f32))
    keys = jax.random.split(key, 7)

    def nrm(kk, shape):
        return jax.random.normal(kk, shape, dtype=f32) * std

    def uni(kk, shape):
        return jax.random.uniform(kk, shape, dtype=f32, minval=-k, maxval=k)

    return {
        "w_enc": nrm(keys[0], (INPUT_DIM, CTX)),
        "b_enc": jnp.zeros((1, CTX), f32),
        "w_ih": uni(keys[1], (CTX + 1, G4)),
        "w_hh": uni(keys[2], (HIDDEN, G4)),
        "b_ih": uni(keys[3], (1, G4)),
        "b_hh": uni(keys[4], (1, G4)),
        "w_glob": nrm(keys[5], (HIDDEN + PRED * CTX, CTX_OUT)),
        "b_glob": jnp.zeros((1, CTX_OUT), f32),
        "w_loc": nrm(keys[6], (3 * CTX, NQ)),
        "b_loc": jnp.zeros((1, NQ), f32),
    }


# ---- plain-JAX reference (mirrors the PyTorch forward exactly) --------------
def reference_forward(x_seq_hist, y_seq_hist, x_seq_pred, p):
    B = x_seq_hist.shape[0]
    x_feat_hist = jnp.tanh(x_seq_hist @ p["w_enc"] + p["b_enc"])   # [B,T,C]
    x_feat_pred = jnp.tanh(x_seq_pred @ p["w_enc"] + p["b_enc"])   # [B,P,C]
    x_total_hist = jnp.concatenate(
        [x_feat_hist, y_seq_hist[..., None]], axis=2)              # [B,T,C+1]

    h = jnp.zeros((B, HIDDEN), jnp.float32)
    c = jnp.zeros((B, HIDDEN), jnp.float32)
    for t in range(HIST):
        xt = x_total_hist[:, t, :]
        g = xt @ p["w_ih"] + p["b_ih"] + h @ p["w_hh"] + p["b_hh"]
        i = jax.nn.sigmoid(g[:, :HIDDEN])
        f = jax.nn.sigmoid(g[:, HIDDEN:2 * HIDDEN])
        gg = jnp.tanh(g[:, 2 * HIDDEN:3 * HIDDEN])
        o = jax.nn.sigmoid(g[:, 3 * HIDDEN:])
        c = f * c + i * gg
        h = o * jnp.tanh(c)
    ht = h

    x_future_1 = x_feat_pred.reshape(B, PRED * CTX)
    ctx = jax.nn.sigmoid(
        jnp.concatenate([ht, x_future_1], axis=1) @ p["w_glob"] + p["b_glob"])
    ca = ctx[:, CTX * PRED:]
    results = []
    for kk in range(PRED):
        xk = x_feat_pred[:, kk, :]
        ck = ctx[:, kk * CTX:(kk + 1) * CTX]
        cak = jnp.concatenate([ck, ca, xk], axis=1)
        results.append(cak @ p["w_loc"] + p["b_loc"])
    result = jnp.stack(results, axis=1)                            # [B,P,Q]
    return result.reshape(B, PRED * NQ)


if __name__ == "__main__":
    B = 2
    key = jax.random.PRNGKey(0)
    k_xh, k_yh, k_xp, k_par = jax.random.split(key, 4)

    x_seq_hist = jax.random.normal(k_xh, (B, HIST, INPUT_DIM), jnp.float32)
    y_seq_hist = jax.random.normal(k_yh, (B, HIST), jnp.float32)
    x_seq_pred = jax.random.normal(k_xp, (B, PRED, INPUT_DIM), jnp.float32)

    params = init_params(k_par)

    out = mq_rnn_forward(x_seq_hist, y_seq_hist, x_seq_pred, params)
    out = jax.block_until_ready(out)

    ref = reference_forward(x_seq_hist, y_seq_hist, x_seq_pred, params)
    assert out.shape == ref.shape == (B, PRED * NQ)
    max_err = float(jnp.max(jnp.abs(out - ref)))
    assert max_err < 1e-4, f"max abs err {max_err}"

    print("KERNEL_OK")
</pallas_src>

<mosaic_0001>
module attributes {stable_mosaic.version = 11 : i64} {
  func.func @mq_rnn_kernel(%arg0: i32, %arg1: memref<8x56xf32, #tpu.memory_space<vmem>>, %arg2: memref<48x96xf32, #tpu.memory_space<vmem>>, %arg3: memref<1x96xf32, #tpu.memory_space<vmem>>, %arg4: memref<64x1024xf32, #tpu.memory_space<vmem>>, %arg5: memref<8x1024xf32, #tpu.memory_space<vmem>>, %arg6: memref<1x1024xf32, #tpu.memory_space<vmem>>, %arg7: memref<32x128xf32, #tpu.memory_space<vmem>>, %arg8: memref<32x40xf32, #tpu.memory_space<vmem>>, %arg9: memref<32x40xf32, #tpu.memory_space<vmem>>, %arg10: memref<1x40xf32, #tpu.memory_space<vmem>>, %arg11: memref<40x12xf32, #tpu.memory_space<vmem>>, %arg12: memref<32x12xf32, #tpu.memory_space<vmem>>, %arg13: memref<1x12xf32, #tpu.memory_space<vmem>>, %arg14: memref<8x12xf32, #tpu.memory_space<vmem>>) attributes {dimension_semantics = [#tpu.dimension_semantics<parallel>], iteration_bounds = array<i64: 1>, scalar_prefetch = 0 : i64, scratch_operands = 0 : i64, tpu.core_type = #tpu.core_type<tc>, window_params = [{transform_indices = @transform_0, window_bounds = array<i64: 8, 56>}, {pipeline_mode = #tpu.pipeline_mode<synchronous>, transform_indices = @transform_1, window_bounds = array<i64: 48, 96>}, {pipeline_mode = #tpu.pipeline_mode<synchronous>, transform_indices = @transform_2, window_bounds = array<i64: 1, 96>}, {pipeline_mode = #tpu.pipeline_mode<synchronous>, transform_indices = @transform_3, window_bounds = array<i64: 64, 1024>}, {pipeline_mode = #tpu.pipeline_mode<synchronous>, transform_indices = @transform_4, window_bounds = array<i64: 8, 1024>}, {pipeline_mode = #tpu.pipeline_mode<synchronous>, transform_indices = @transform_5, window_bounds = array<i64: 1, 1024>}, {pipeline_mode = #tpu.pipeline_mode<synchronous>, transform_indices = @transform_6, window_bounds = array<i64: 32, 128>}, {pipeline_mode = #tpu.pipeline_mode<synchronous>, transform_indices = @transform_7, window_bounds = array<i64: 32, 40>}, {pipeline_mode = #tpu.pipeline_mode<synchronous>, transform_indices = @transform_8, window_bounds = array<i64: 32, 40>}, {pipeline_mode = #tpu.pipeline_mode<synchronous>, transform_indices = @transform_9, window_bounds = array<i64: 1, 40>}, {pipeline_mode = #tpu.pipeline_mode<synchronous>, transform_indices = @transform_10, window_bounds = array<i64: 40, 12>}, {pipeline_mode = #tpu.pipeline_mode<synchronous>, transform_indices = @transform_11, window_bounds = array<i64: 32, 12>}, {pipeline_mode = #tpu.pipeline_mode<synchronous>, transform_indices = @transform_12, window_bounds = array<i64: 1, 12>}, {transform_indices = @transform_13, window_bounds = array<i64: 8, 12>}]} {
    %c0 = arith.constant 0 : index
    %c0_0 = arith.constant 0 : index
    %0 = vector.load %arg1[%c0, %c0_0] : memref<8x56xf32, #tpu.memory_space<vmem>>, vector<8x56xf32>
    %1 = vector.extract_strided_slice %0 {offsets = [0, 0], sizes = [8, 48], strides = [1, 1]} : vector<8x56xf32> to vector<8x48xf32>
    %2 = vector.extract_strided_slice %0 {offsets = [0, 48], sizes = [8, 8], strides = [1, 1]} : vector<8x56xf32> to vector<8x8xf32>
    %c0_1 = arith.constant 0 : index
    %c0_2 = arith.constant 0 : index
    %3 = vector.load %arg2[%c0_1, %c0_2] : memref<48x96xf32, #tpu.memory_space<vmem>>, vector<48x96xf32>
    %cst = arith.constant dense<0.000000e+00> : vector<8x96xf32>
    %4 = tpu.matmul %1, %3, %cst {dimension_numbers = #tpu.dot_dimension_numbers<[1], [0], [0], [1], [0, 0, 1, 1], [], []>} : vector<8x48xf32>, vector<48x96xf32>, vector<8x96xf32> -> vector<8x96xf32>
    %c0_3 = arith.constant 0 : index
    %c0_4 = arith.constant 0 : index
    %5 = vector.load %arg3[%c0_3, %c0_4] : memref<1x96xf32, #tpu.memory_space<vmem>>, vector<1x96xf32>
    %6 = vector.broadcast %5 : vector<1x96xf32> to vector<8x96xf32>
    %7 = arith.addf %4, %6 : vector<8x96xf32>
    %8 = math.tanh %7 : vector<8x96xf32>
    %9 = vector.extract_strided_slice %8 {offsets = [0, 0], sizes = [8, 64], strides = [1, 1]} : vector<8x96xf32> to vector<8x64xf32>
    %10 = vector.extract_strided_slice %8 {offsets = [0, 64], sizes = [8, 32], strides = [1, 1]} : vector<8x96xf32> to vector<8x32xf32>
    %c0_5 = arith.constant 0 : index
    %c0_6 = arith.constant 0 : index
    %11 = vector.load %arg4[%c0_5, %c0_6] : memref<64x1024xf32, #tpu.memory_space<vmem>>, vector<64x1024xf32>
    %cst_7 = arith.constant dense<0.000000e+00> : vector<8x1024xf32>
    %12 = tpu.matmul %9, %11, %cst_7 {dimension_numbers = #tpu.dot_dimension_numbers<[1], [0], [0], [1], [0, 0, 1, 1], [], []>} : vector<8x64xf32>, vector<64x1024xf32>, vector<8x1024xf32> -> vector<8x1024xf32>
    %c0_8 = arith.constant 0 : index
    %c0_9 = arith.constant 0 : index
    %13 = vector.load %arg5[%c0_8, %c0_9] : memref<8x1024xf32, #tpu.memory_space<vmem>>, vector<8x1024xf32>
    %cst_10 = arith.constant dense<0.000000e+00> : vector<8x1024xf32>
    %14 = tpu.matmul %2, %13, %cst_10 {dimension_numbers = #tpu.dot_dimension_numbers<[1], [0], [0], [1], [0, 0, 1, 1], [], []>} : vector<8x8xf32>, vector<8x1024xf32>, vector<8x1024xf32> -> vector<8x1024xf32>
    %15 = arith.addf %12, %14 : vector<8x1024xf32>
    %c0_11 = arith.constant 0 : index
    %c0_12 = arith.constant 0 : index
    %16 = vector.load %arg6[%c0_11, %c0_12] : memref<1x1024xf32, #tpu.memory_space<vmem>>, vector<1x1024xf32>
    %17 = vector.broadcast %16 : vector<1x1024xf32> to vector<8x1024xf32>
    %18 = arith.addf %15, %17 : vector<8x1024xf32>
    %cst_13 = arith.constant 0.000000e+00 : f32
    %19 = vector.broadcast %cst_13 : f32 to vector<8x32xf32>
    %cst_14 = arith.constant 0.000000e+00 : f32
    %20 = vector.broadcast %cst_14 : f32 to vector<8x32xf32>
    %c0_15 = arith.constant 0 : index
    %c0_16 = arith.constant 0 : index
    %21 = vector.load %arg7[%c0_15, %c0_16] : memref<32x128xf32, #tpu.memory_space<vmem>>, vector<32x128xf32>
    %22 = vector.extract_strided_slice %18 {offsets = [0, 0], sizes = [8, 128], strides = [1, 1]} : vector<8x1024xf32> to vector<8x128xf32>
    %cst_17 = arith.constant dense<0.000000e+00> : vector<8x128xf32>
    %23 = tpu.matmul %19, %21, %cst_17 {dimension_numbers = #tpu.dot_dimension_numbers<[1], [0], [0], [1], [0, 0, 1, 1], [], []>} : vector<8x32xf32>, vector<32x128xf32>, vector<8x128xf32> -> vector<8x128xf32>
    %24 = arith.addf %22, %23 : vector<8x128xf32>
    %25 = vector.extract_strided_slice %24 {offsets = [0, 0], sizes = [8, 32], strides = [1, 1]} : vector<8x128xf32> to vector<8x32xf32>
    %26 = arith.negf %25 : vector<8x32xf32>
    %27 = math.exp %26 : vector<8x32xf32>
    %cst_18 = arith.constant 1.000000e+00 : f32
    %28 = vector.broadcast %cst_18 : f32 to vector<8x32xf32>
    %29 = arith.addf %28, %27 : vector<8x32xf32>
    %30 = arith.divf %28, %29 : vector<8x32xf32>
    %31 = vector.extract_strided_slice %24 {offsets = [0, 32], sizes = [8, 32], strides = [1, 1]} : vector<8x128xf32> to vector<8x32xf32>
    %32 = arith.negf %31 : vector<8x32xf32>
    %33 = math.exp %32 : vector<8x32xf32>
    %cst_19 = arith.constant 1.000000e+00 : f32
    %34 = vector.broadcast %cst_19 : f32 to vector<8x32xf32>
    %35 = arith.addf %34, %33 : vector<8x32xf32>
    %36 = arith.divf %34, %35 : vector<8x32xf32>
    %37 = vector.extract_strided_slice %24 {offsets = [0, 64], sizes = [8, 32], strides = [1, 1]} : vector<8x128xf32> to vector<8x32xf32>
    %38 = math.tanh %37 : vector<8x32xf32>
    %39 = vector.extract_strided_slice %24 {offsets = [0, 96], sizes = [8, 32], strides = [1, 1]} : vector<8x128xf32> to vector<8x32xf32>
    %40 = arith.negf %39 : vector<8x32xf32>
    %41 = math.exp %40 : vector<8x32xf32>
    %cst_20 = arith.constant 1.000000e+00 : f32
    %42 = vector.broadcast %cst_20 : f32 to vector<8x32xf32>
    %43 = arith.addf %42, %41 : vector<8x32xf32>
    %44 = arith.divf %42, %43 : vector<8x32xf32>
    %45 = arith.mulf %36, %20 : vector<8x32xf32>
    %46 = arith.mulf %30, %38 : vector<8x32xf32>
    %47 = arith.addf %45, %46 : vector<8x32xf32>
    %48 = math.tanh %47 : vector<8x32xf32>
    %49 = arith.mulf %44, %48 : vector<8x32xf32>
    %50 = vector.extract_strided_slice %18 {offsets = [0, 128], sizes = [8, 128], strides = [1, 1]} : vector<8x1024xf32> to vector<8x128xf32>
    %cst_21 = arith.constant dense<0.000000e+00> : vector<8x128xf32>
    %51 = tpu.matmul %49, %21, %cst_21 {dimension_numbers = #tpu.dot_dimension_numbers<[1], [0], [0], [1], [0, 0, 1, 1], [], []>} : vector<8x32xf32>, vector<32x128xf32>, vector<8x128xf32> -> vector<8x128xf32>
    %52 = arith.addf %50, %51 : vector<8x128xf32>
    %53 = vector.extract_strided_slice %52 {offsets = [0, 0], sizes = [8, 32], strides = [1, 1]} : vector<8x128xf32> to vector<8x32xf32>
    %54 = arith.negf %53 : vector<8x32xf32>
    %55 = math.exp %54 : vector<8x32xf32>
    %cst_22 = arith.constant 1.000000e+00 : f32
    %56 = vector.broadcast %cst_22 : f32 to vector<8x32xf32>
    %57 = arith.addf %56, %55 : vector<8x32xf32>
    %58 = arith.divf %56, %57 : vector<8x32xf32>
    %59 = vector.extract_strided_slice %52 {offsets = [0, 32], sizes = [8, 32], strides = [1, 1]} : vector<8x128xf32> to vector<8x32xf32>
    %60 = arith.negf %59 : vector<8x32xf32>
    %61 = math.exp %60 : vector<8x32xf32>
    %cst_23 = arith.constant 1.000000e+00 : f32
    %62 = vector.broadcast %cst_23 : f32 to vector<8x32xf32>
    %63 = arith.addf %62, %61 : vector<8x32xf32>
    %64 = arith.divf %62, %63 : vector<8x32xf32>
    %65 = vector.extract_strided_slice %52 {offsets = [0, 64], sizes = [8, 32], strides = [1, 1]} : vector<8x128xf32> to vector<8x32xf32>
    %66 = math.tanh %65 : vector<8x32xf32>
    %67 = vector.extract_strided_slice %52 {offsets = [0, 96], sizes = [8, 32], strides = [1, 1]} : vector<8x128xf32> to vector<8x32xf32>
    %68 = arith.negf %67 : vector<8x32xf32>
    %69 = math.exp %68 : vector<8x32xf32>
    %cst_24 = arith.constant 1.000000e+00 : f32
    %70 = vector.broadcast %cst_24 : f32 to vector<8x32xf32>
    %71 = arith.addf %70, %69 : vector<8x32xf32>
    %72 = arith.divf %70, %71 : vector<8x32xf32>
    %73 = arith.mulf %64, %47 : vector<8x32xf32>
    %74 = arith.mulf %58, %66 : vector<8x32xf32>
    %75 = arith.addf %73, %74 : vector<8x32xf32>
    %76 = math.tanh %75 : vector<8x32xf32>
    %77 = arith.mulf %72, %76 : vector<8x32xf32>
    %78 = vector.extract_strided_slice %18 {offsets = [0, 256], sizes = [8, 128], strides = [1, 1]} : vector<8x1024xf32> to vector<8x128xf32>
    %cst_25 = arith.constant dense<0.000000e+00> : vector<8x128xf32>
    %79 = tpu.matmul %77, %21, %cst_25 {dimension_numbers = #tpu.dot_dimension_numbers<[1], [0], [0], [1], [0, 0, 1, 1], [], []>} : vector<8x32xf32>, vector<32x128xf32>, vector<8x128xf32> -> vector<8x128xf32>
    %80 = arith.addf %78, %79 : vector<8x128xf32>
    %81 = vector.extract_strided_slice %80 {offsets = [0, 0], sizes = [8, 32], strides = [1, 1]} : vector<8x128xf32> to vector<8x32xf32>
    %82 = arith.negf %81 : vector<8x32xf32>
    %83 = math.exp %82 : vector<8x32xf32>
    %cst_26 = arith.constant 1.000000e+00 : f32
    %84 = vector.broadcast %cst_26 : f32 to vector<8x32xf32>
    %85 = arith.addf %84, %83 : vector<8x32xf32>
    %86 = arith.divf %84, %85 : vector<8x32xf32>
    %87 = vector.extract_strided_slice %80 {offsets = [0, 32], sizes = [8, 32], strides = [1, 1]} : vector<8x128xf32> to vector<8x32xf32>
    %88 = arith.negf %87 : vector<8x32xf32>
    %89 = math.exp %88 : vector<8x32xf32>
    %cst_27 = arith.constant 1.000000e+00 : f32
    %90 = vector.broadcast %cst_27 : f32 to vector<8x32xf32>
    %91 = arith.addf %90, %89 : vector<8x32xf32>
    %92 = arith.divf %90, %91 : vector<8x32xf32>
    %93 = vector.extract_strided_slice %80 {offsets = [0, 64], sizes = [8, 32], strides = [1, 1]} : vector<8x128xf32> to vector<8x32xf32>
    %94 = math.tanh %93 : vector<8x32xf32>
    %95 = vector.extract_strided_slice %80 {offsets = [0, 96], sizes = [8, 32], strides = [1, 1]} : vector<8x128xf32> to vector<8x32xf32>
    %96 = arith.negf %95 : vector<8x32xf32>
    %97 = math.exp %96 : vector<8x32xf32>
    %cst_28 = arith.constant 1.000000e+00 : f32
    %98 = vector.broadcast %cst_28 : f32 to vector<8x32xf32>
    %99 = arith.addf %98, %97 : vector<8x32xf32>
    %100 = arith.divf %98, %99 : vector<8x32xf32>
    %101 = arith.mulf %92, %75 : vector<8x32xf32>
    %102 = arith.mulf %86, %94 : vector<8x32xf32>
    %103 = arith.addf %101, %102 : vector<8x32xf32>
    %104 = math.tanh %103 : vector<8x32xf32>
    %105 = arith.mulf %100, %104 : vector<8x32xf32>
    %106 = vector.extract_strided_slice %18 {offsets = [0, 384], sizes = [8, 128], strides = [1, 1]} : vector<8x1024xf32> to vector<8x128xf32>
    %cst_29 = arith.constant dense<0.000000e+00> : vector<8x128xf32>
    %107 = tpu.matmul %105, %21, %cst_29 {dimension_numbers = #tpu.dot_dimension_numbers<[1], [0], [0], [1], [0, 0, 1, 1], [], []>} : vector<8x32xf32>, vector<32x128xf32>, vector<8x128xf32> -> vector<8x128xf32>
    %108 = arith.addf %106, %107 : vector<8x128xf32>
    %109 = vector.extract_strided_slice %108 {offsets = [0, 0], sizes = [8, 32], strides = [1, 1]} : vector<8x128xf32> to vector<8x32xf32>
    %110 = arith.negf %109 : vector<8x32xf32>
    %111 = math.exp %110 : vector<8x32xf32>
    %cst_30 = arith.constant 1.000000e+00 : f32
    %112 = vector.broadcast %cst_30 : f32 to vector<8x32xf32>
    %113 = arith.addf %112, %111 : vector<8x32xf32>
    %114 = arith.divf %112, %113 : vector<8x32xf32>
    %115 = vector.extract_strided_slice %108 {offsets = [0, 32], sizes = [8, 32], strides = [1, 1]} : vector<8x128xf32> to vector<8x32xf32>
    %116 = arith.negf %115 : vector<8x32xf32>
    %117 = math.exp %116 : vector<8x32xf32>
    %cst_31 = arith.constant 1.000000e+00 : f32
    %118 = vector.broadcast %cst_31 : f32 to vector<8x32xf32>
    %119 = arith.addf %118, %117 : vector<8x32xf32>
    %120 = arith.divf %118, %119 : vector<8x32xf32>
    %121 = vector.extract_strided_slice %108 {offsets = [0, 64], sizes = [8, 32], strides = [1, 1]} : vector<8x128xf32> to vector<8x32xf32>
    %122 = math.tanh %121 : vector<8x32xf32>
    %123 = vector.extract_strided_slice %108 {offsets = [0, 96], sizes = [8, 32], strides = [1, 1]} : vector<8x128xf32> to vector<8x32xf32>
    %124 = arith.negf %123 : vector<8x32xf32>
    %125 = math.exp %124 : vector<8x32xf32>
    %cst_32 = arith.constant 1.000000e+00 : f32
    %126 = vector.broadcast %cst_32 : f32 to vector<8x32xf32>
    %127 = arith.addf %126, %125 : vector<8x32xf32>
    %128 = arith.divf %126, %127 : vector<8x32xf32>
    %129 = arith.mulf %120, %103 : vector<8x32xf32>
    %130 = arith.mulf %114, %122 : vector<8x32xf32>
    %131 = arith.addf %129, %130 : vector<8x32xf32>
    %132 = math.tanh %131 : vector<8x32xf32>
    %133 = arith.mulf %128, %132 : vector<8x32xf32>
    %134 = vector.extract_strided_slice %18 {offsets = [0, 512], sizes = [8, 128], strides = [1, 1]} : vector<8x1024xf32> to vector<8x128xf32>
    %cst_33 = arith.constant dense<0.000000e+00> : vector<8x128xf32>
    %135 = tpu.matmul %133, %21, %cst_33 {dimension_numbers = #tpu.dot_dimension_numbers<[1], [0], [0], [1], [0, 0, 1, 1], [], []>} : vector<8x32xf32>, vector<32x128xf32>, vector<8x128xf32> -> vector<8x128xf32>
    %136 = arith.addf %134, %135 : vector<8x128xf32>
    %137 = vector.extract_strided_slice %136 {offsets = [0, 0], sizes = [8, 32], strides = [1, 1]} : vector<8x128xf32> to vector<8x32xf32>
    %138 = arith.negf %137 : vector<8x32xf32>
    %139 = math.exp %138 : vector<8x32xf32>
    %cst_34 = arith.constant 1.000000e+00 : f32
    %140 = vector.broadcast %cst_34 : f32 to vector<8x32xf32>
    %141 = arith.addf %140, %139 : vector<8x32xf32>
    %142 = arith.divf %140, %141 : vector<8x32xf32>
    %143 = vector.extract_strided_slice %136 {offsets = [0, 32], sizes = [8, 32], strides = [1, 1]} : vector<8x128xf32> to vector<8x32xf32>
    %144 = arith.negf %143 : vector<8x32xf32>
    %145 = math.exp %144 : vector<8x32xf32>
    %cst_35 = arith.constant 1.000000e+00 : f32
    %146 = vector.broadcast %cst_35 : f32 to vector<8x32xf32>
    %147 = arith.addf %146, %145 : vector<8x32xf32>
    %148 = arith.divf %146, %147 : vector<8x32xf32>
    %149 = vector.extract_strided_slice %136 {offsets = [0, 64], sizes = [8, 32], strides = [1, 1]} : vector<8x128xf32> to vector<8x32xf32>
    %150 = math.tanh %149 : vector<8x32xf32>
    %151 = vector.extract_strided_slice %136 {offsets = [0, 96], sizes = [8, 32], strides = [1, 1]} : vector<8x128xf32> to vector<8x32xf32>
    %152 = arith.negf %151 : vector<8x32xf32>
    %153 = math.exp %152 : vector<8x32xf32>
    %cst_36 = arith.constant 1.000000e+00 : f32
    %154 = vector.broadcast %cst_36 : f32 to vector<8x32xf32>
    %155 = arith.addf %154, %153 : vector<8x32xf32>
    %156 = arith.divf %154, %155 : vector<8x32xf32>
    %157 = arith.mulf %148, %131 : vector<8x32xf32>
    %158 = arith.mulf %142, %150 : vector<8x32xf32>
    %159 = arith.addf %157, %158 : vector<8x32xf32>
    %160 = math.tanh %159 : vector<8x32xf32>
    %161 = arith.mulf %156, %160 : vector<8x32xf32>
    %162 = vector.extract_strided_slice %18 {offsets = [0, 640], sizes = [8, 128], strides = [1, 1]} : vector<8x1024xf32> to vector<8x128xf32>
    %cst_37 = arith.constant dense<0.000000e+00> : vector<8x128xf32>
    %163 = tpu.matmul %161, %21, %cst_37 {dimension_numbers = #tpu.dot_dimension_numbers<[1], [0], [0], [1], [0, 0, 1, 1], [], []>} : vector<8x32xf32>, vector<32x128xf32>, vector<8x128xf32> -> vector<8x128xf32>
    %164 = arith.addf %162, %163 : vector<8x128xf32>
    %165 = vector.extract_strided_slice %164 {offsets = [0, 0], sizes = [8, 32], strides = [1, 1]} : vector<8x128xf32> to vector<8x32xf32>
    %166 = arith.negf %165 : vector<8x32xf32>
    %167 = math.exp %166 : vector<8x32xf32>
    %cst_38 = arith.constant 1.000000e+00 : f32
    %168 = vector.broadcast %cst_38 : f32 to vector<8x32xf32>
    %169 = arith.addf %168, %167 : vector<8x32xf32>
    %170 = arith.divf %168, %169 : vector<8x32xf32>
    %171 = vector.extract_strided_slice %164 {offsets = [0, 32], sizes = [8, 32], strides = [1, 1]} : vector<8x128xf32> to vector<8x32xf32>
    %172 = arith.negf %171 : vector<8x32xf32>
    %173 = math.exp %172 : vector<8x32xf32>
    %cst_39 = arith.constant 1.000000e+00 : f32
    %174 = vector.broadcast %cst_39 : f32 to vector<8x32xf32>
    %175 = arith.addf %174, %173 : vector<8x32xf32>
    %176 = arith.divf %174, %175 : vector<8x32xf32>
    %177 = vector.extract_strided_slice %164 {offsets = [0, 64], sizes = [8, 32], strides = [1, 1]} : vector<8x128xf32> to vector<8x32xf32>
    %178 = math.tanh %177 : vector<8x32xf32>
    %179 = vector.extract_strided_slice %164 {offsets = [0, 96], sizes = [8, 32], strides = [1, 1]} : vector<8x128xf32> to vector<8x32xf32>
    %180 = arith.negf %179 : vector<8x32xf32>
    %181 = math.exp %180 : vector<8x32xf32>
    %cst_40 = arith.constant 1.000000e+00 : f32
    %182 = vector.broadcast %cst_40 : f32 to vector<8x32xf32>
    %183 = arith.addf %182, %181 : vector<8x32xf32>
    %184 = arith.divf %182, %183 : vector<8x32xf32>
    %185 = arith.mulf %176, %159 : vector<8x32xf32>
    %186 = arith.mulf %170, %178 : vector<8x32xf32>
    %187 = arith.addf %185, %186 : vector<8x32xf32>
    %188 = math.tanh %187 : vector<8x32xf32>
    %189 = arith.mulf %184, %188 : vector<8x32xf32>
    %190 = vector.extract_strided_slice %18 {offsets = [0, 768], sizes = [8, 128], strides = [1, 1]} : vector<8x1024xf32> to vector<8x128xf32>
    %cst_41 = arith.constant dense<0.000000e+00> : vector<8x128xf32>
    %191 = tpu.matmul %189, %21, %cst_41 {dimension_numbers = #tpu.dot_dimension_numbers<[1], [0], [0], [1], [0, 0, 1, 1], [], []>} : vector<8x32xf32>, vector<32x128xf32>, vector<8x128xf32> -> vector<8x128xf32>
    %192 = arith.addf %190, %191 : vector<8x128xf32>
    %193 = vector.extract_strided_slice %192 {offsets = [0, 0], sizes = [8, 32], strides = [1, 1]} : vector<8x128xf32> to vector<8x32xf32>
    %194 = arith.negf %193 : vector<8x32xf32>
    %195 = math.exp %194 : vector<8x32xf32>
    %cst_42 = arith.constant 1.000000e+00 : f32
    %196 = vector.broadcast %cst_42 : f32 to vector<8x32xf32>
    %197 = arith.addf %196, %195 : vector<8x32xf32>
    %198 = arith.divf %196, %197 : vector<8x32xf32>
    %199 = vector.extract_strided_slice %192 {offsets = [0, 32], sizes = [8, 32], strides = [1, 1]} : vector<8x128xf32> to vector<8x32xf32>
    %200 = arith.negf %199 : vector<8x32xf32>
    %201 = math.exp %200 : vector<8x32xf32>
    %cst_43 = arith.constant 1.000000e+00 : f32
    %202 = vector.broadcast %cst_43 : f32 to vector<8x32xf32>
    %203 = arith.addf %202, %201 : vector<8x32xf32>
    %204 = arith.divf %202, %203 : vector<8x32xf32>
    %205 = vector.extract_strided_slice %192 {offsets = [0, 64], sizes = [8, 32], strides = [1, 1]} : vector<8x128xf32> to vector<8x32xf32>
    %206 = math.tanh %205 : vector<8x32xf32>
    %207 = vector.extract_strided_slice %192 {offsets = [0, 96], sizes = [8, 32], strides = [1, 1]} : vector<8x128xf32> to vector<8x32xf32>
    %208 = arith.negf %207 : vector<8x32xf32>
    %209 = math.exp %208 : vector<8x32xf32>
    %cst_44 = arith.constant 1.000000e+00 : f32
    %210 = vector.broadcast %cst_44 : f32 to vector<8x32xf32>
    %211 = arith.addf %210, %209 : vector<8x32xf32>
    %212 = arith.divf %210, %211 : vector<8x32xf32>
    %213 = arith.mulf %204, %187 : vector<8x32xf32>
    %214 = arith.mulf %198, %206 : vector<8x32xf32>
    %215 = arith.addf %213, %214 : vector<8x32xf32>
    %216 = math.tanh %215 : vector<8x32xf32>
    %217 = arith.mulf %212, %216 : vector<8x32xf32>
    %218 = vector.extract_strided_slice %18 {offsets = [0, 896], sizes = [8, 128], strides = [1, 1]} : vector<8x1024xf32> to vector<8x128xf32>
    %cst_45 = arith.constant dense<0.000000e+00> : vector<8x128xf32>
    %219 = tpu.matmul %217, %21, %cst_45 {dimension_numbers = #tpu.dot_dimension_numbers<[1], [0], [0], [1], [0, 0, 1, 1], [], []>} : vector<8x32xf32>, vector<32x128xf32>, vector<8x128xf32> -> vector<8x128xf32>
    %220 = arith.addf %218, %219 : vector<8x128xf32>
    %221 = vector.extract_strided_slice %220 {offsets = [0, 0], sizes = [8, 32], strides = [1, 1]} : vector<8x128xf32> to vector<8x32xf32>
    %222 = arith.negf %221 : vector<8x32xf32>
    %223 = math.exp %222 : vector<8x32xf32>
    %cst_46 = arith.constant 1.000000e+00 : f32
    %224 = vector.broadcast %cst_46 : f32 to vector<8x32xf32>
    %225 = arith.addf %224, %223 : vector<8x32xf32>
    %226 = arith.divf %224, %225 : vector<8x32xf32>
    %227 = vector.extract_strided_slice %220 {offsets = [0, 32], sizes = [8, 32], strides = [1, 1]} : vector<8x128xf32> to vector<8x32xf32>
    %228 = arith.negf %227 : vector<8x32xf32>
    %229 = math.exp %228 : vector<8x32xf32>
    %cst_47 = arith.constant 1.000000e+00 : f32
    %230 = vector.broadcast %cst_47 : f32 to vector<8x32xf32>
    %231 = arith.addf %230, %229 : vector<8x32xf32>
    %232 = arith.divf %230, %231 : vector<8x32xf32>
    %233 = vector.extract_strided_slice %220 {offsets = [0, 64], sizes = [8, 32], strides = [1, 1]} : vector<8x128xf32> to vector<8x32xf32>
    %234 = math.tanh %233 : vector<8x32xf32>
    %235 = vector.extract_strided_slice %220 {offsets = [0, 96], sizes = [8, 32], strides = [1, 1]} : vector<8x128xf32> to vector<8x32xf32>
    %236 = arith.negf %235 : vector<8x32xf32>
    %237 = math.exp %236 : vector<8x32xf32>
    %cst_48 = arith.constant 1.000000e+00 : f32
    %238 = vector.broadcast %cst_48 : f32 to vector<8x32xf32>
    %239 = arith.addf %238, %237 : vector<8x32xf32>
    %240 = arith.divf %238, %239 : vector<8x32xf32>
    %241 = arith.mulf %232, %215 : vector<8x32xf32>
    %242 = arith.mulf %226, %234 : vector<8x32xf32>
    %243 = arith.addf %241, %242 : vector<8x32xf32>
    %244 = math.tanh %243 : vector<8x32xf32>
    %245 = arith.mulf %240, %244 : vector<8x32xf32>
    %c0_49 = arith.constant 0 : index
    %c0_50 = arith.constant 0 : index
    %246 = vector.load %arg8[%c0_49, %c0_50] : memref<32x40xf32, #tpu.memory_space<vmem>>, vector<32x40xf32>
    %cst_51 = arith.constant dense<0.000000e+00> : vector<8x40xf32>
    %247 = tpu.matmul %245, %246, %cst_51 {dimension_numbers = #tpu.dot_dimension_numbers<[1], [0], [0], [1], [0, 0, 1, 1], [], []>} : vector<8x32xf32>, vector<32x40xf32>, vector<8x40xf32> -> vector<8x40xf32>
    %c0_52 = arith.constant 0 : index
    %c0_53 = arith.constant 0 : index
    %248 = vector.load %arg9[%c0_52, %c0_53] : memref<32x40xf32, #tpu.memory_space<vmem>>, vector<32x40xf32>
    %cst_54 = arith.constant dense<0.000000e+00> : vector<8x40xf32>
    %249 = tpu.matmul %10, %248, %cst_54 {dimension_numbers = #tpu.dot_dimension_numbers<[1], [0], [0], [1], [0, 0, 1, 1], [], []>} : vector<8x32xf32>, vector<32x40xf32>, vector<8x40xf32> -> vector<8x40xf32>
    %250 = arith.addf %247, %249 : vector<8x40xf32>
    %c0_55 = arith.constant 0 : index
    %c0_56 = arith.constant 0 : index
    %251 = vector.load %arg10[%c0_55, %c0_56] : memref<1x40xf32, #tpu.memory_space<vmem>>, vector<1x40xf32>
    %252 = vector.broadcast %251 : vector<1x40xf32> to vector<8x40xf32>
    %253 = arith.addf %250, %252 : vector<8x40xf32>
    %254 = arith.negf %253 : vector<8x40xf32>
    %255 = math.exp %254 : vector<8x40xf32>
    %cst_57 = arith.constant 1.000000e+00 : f32
    %256 = vector.broadcast %cst_57 : f32 to vector<8x40xf32>
    %257 = arith.addf %256, %255 : vector<8x40xf32>
    %258 = arith.divf %256, %257 : vector<8x40xf32>
    %c0_58 = arith.constant 0 : index
    %c0_59 = arith.constant 0 : index
    %259 = vector.load %arg11[%c0_58, %c0_59] : memref<40x12xf32, #tpu.memory_space<vmem>>, vector<40x12xf32>
    %cst_60 = arith.constant dense<0.000000e+00> : vector<8x12xf32>
    %260 = tpu.matmul %258, %259, %cst_60 {dimension_numbers = #tpu.dot_dimension_numbers<[1], [0], [0], [1], [0, 0, 1, 1], [], []>} : vector<8x40xf32>, vector<40x12xf32>, vector<8x12xf32> -> vector<8x12xf32>
    %c0_61 = arith.constant 0 : index
    %c0_62 = arith.constant 0 : index
    %261 = vector.load %arg12[%c0_61, %c0_62] : memref<32x12xf32, #tpu.memory_space<vmem>>, vector<32x12xf32>
    %cst_63 = arith.constant dense<0.000000e+00> : vector<8x12xf32>
    %262 = tpu.matmul %10, %261, %cst_63 {dimension_numbers = #tpu.dot_dimension_numbers<[1], [0], [0], [1], [0, 0, 1, 1], [], []>} : vector<8x32xf32>, vector<32x12xf32>, vector<8x12xf32> -> vector<8x12xf32>
    %263 = arith.addf %260, %262 : vector<8x12xf32>
    %c0_64 = arith.constant 0 : index
    %c0_65 = arith.constant 0 : index
    %264 = vector.load %arg13[%c0_64, %c0_65] : memref<1x12xf32, #tpu.memory_space<vmem>>, vector<1x12xf32>
    %265 = vector.broadcast %264 : vector<1x12xf32> to vector<8x12xf32>
    %266 = arith.addf %263, %265 : vector<8x12xf32>
    %c0_66 = arith.constant 0 : index
    %c0_67 = arith.constant 0 : index
    %267 = vector.load %arg14[%c0_66, %c0_67] : memref<8x12xf32, #tpu.memory_space<vmem>>, vector<8x12xf32>
    tpu.vector_store %arg14[%c0_66, %c0_67], %266 {strides = array<i32>} : memref<8x12xf32, #tpu.memory_space<vmem>>, vector<8x12xf32>,
    return
  }
  func.func @transform_0(%arg0: i32) -> (i32, i32) {
    %c0_i32 = arith.constant 0 : i32
    %c0_i32_0 = arith.constant 0 : i32
    return %arg0, %c0_i32 : i32, i32
  }
  func.func @transform_1(%arg0: i32) -> (i32, i32) {
    %c0_i32 = arith.constant 0 : i32
    %c0_i32_0 = arith.constant 0 : i32
    %c0_i32_1 = arith.constant 0 : i32
    return %c0_i32, %c0_i32_0 : i32, i32
  }
  func.func @transform_2(%arg0: i32) -> (i32, i32) {
    %c0_i32 = arith.constant 0 : i32
    %c0_i32_0 = arith.constant 0 : i32
    %c0_i32_1 = arith.constant 0 : i32
    return %c0_i32, %c0_i32_0 : i32, i32
  }
  func.func @transform_3(%arg0: i32) -> (i32, i32) {
    %c0_i32 = arith.constant 0 : i32
    %c0_i32_0 = arith.constant 0 : i32
    %c0_i32_1 = arith.constant 0 : i32
    return %c0_i32, %c0_i32_0 : i32, i32
  }
  func.func @transform_4(%arg0: i32) -> (i32, i32) {
    %c0_i32 = arith.constant 0 : i32
    %c0_i32_0 = arith.constant 0 : i32
    %c0_i32_1 = arith.constant 0 : i32
    return %c0_i32, %c0_i32_0 : i32, i32
  }
  func.func @transform_5(%arg0: i32) -> (i32, i32) {
    %c0_i32 = arith.constant 0 : i32
    %c0_i32_0 = arith.constant 0 : i32
    %c0_i32_1 = arith.constant 0 : i32
    return %c0_i32, %c0_i32_0 : i32, i32
  }
  func.func @transform_6(%arg0: i32) -> (i32, i32) {
    %c0_i32 = arith.constant 0 : i32
    %c0_i32_0 = arith.constant 0 : i32
    %c0_i32_1 = arith.constant 0 : i32
    return %c0_i32, %c0_i32_0 : i32, i32
  }
  func.func @transform_7(%arg0: i32) -> (i32, i32) {
    %c0_i32 = arith.constant 0 : i32
    %c0_i32_0 = arith.constant 0 : i32
    %c0_i32_1 = arith.constant 0 : i32
    return %c0_i32, %c0_i32_0 : i32, i32
  }
  func.func @transform_8(%arg0: i32) -> (i32, i32) {
    %c0_i32 = arith.constant 0 : i32
    %c0_i32_0 = arith.constant 0 : i32
    %c0_i32_1 = arith.constant 0 : i32
    return %c0_i32, %c0_i32_0 : i32, i32
  }
  func.func @transform_9(%arg0: i32) -> (i32, i32) {
    %c0_i32 = arith.constant 0 : i32
    %c0_i32_0 = arith.constant 0 : i32
    %c0_i32_1 = arith.constant 0 : i32
    return %c0_i32, %c0_i32_0 : i32, i32
  }
  func.func @transform_10(%arg0: i32) -> (i32, i32) {
    %c0_i32 = arith.constant 0 : i32
    %c0_i32_0 = arith.constant 0 : i32
    %c0_i32_1 = arith.constant 0 : i32
    return %c0_i32, %c0_i32_0 : i32, i32
  }
  func.func @transform_11(%arg0: i32) -> (i32, i32) {
    %c0_i32 = arith.constant 0 : i32
    %c0_i32_0 = arith.constant 0 : i32
    %c0_i32_1 = arith.constant 0 : i32
    return %c0_i32, %c0_i32_0 : i32, i32
  }
  func.func @transform_12(%arg0: i32) -> (i32, i32) {
    %c0_i32 = arith.constant 0 : i32
    %c0_i32_0 = arith.constant 0 : i32
    %c0_i32_1 = arith.constant 0 : i32
    return %c0_i32, %c0_i32_0 : i32, i32
  }
  func.func @transform_13(%arg0: i32) -> (i32, i32) {
    %c0_i32 = arith.constant 0 : i32
    %c0_i32_0 = arith.constant 0 : i32
    return %arg0, %c0_i32 : i32, i32
  }
}

</mosaic_0001>

<bundles_post_ra>
// kernel: tpu_custom_call.1
= control target key start
LH: loop header
LB: loop body
LE: loop exit
PB: predicated region body
PF: predicated region fallthrough
CT: control target
= control target key end

     0   :  { %18 = vsyncpa [#allocation3], 0  ;;  %s1928_s0 = inlined_call_operand.hbm [shape: f32[8,56], index: 0, kind: input, shape index: {}]   ;;  %s1929_s1 = inlined_call_operand.hbm [shape: f32[48,96], index: 1, kind: input, shape index: {}]   ;;  %s1930_s2 = inlined_call_operand.hbm [shape: f32[1,96], index: 2, kind: input, shape index: {}]   ;;  %s1931_s3 = inlined_call_operand.hbm [shape: f32[64,1024], index: 3, kind: input, shape index: {}]   ;;  %s1932_s4 = inlined_call_operand.vmem [shape: f32[8,1024], index: 4, kind: input, shape index: {}]   ;;  %s1933_s5 = inlined_call_operand.hbm [shape: f32[1,1024], index: 5, kind: input, shape index: {}]   ;;  %s1934_s6 = inlined_call_operand.vmem [shape: f32[32,128], index: 6, kind: input, shape index: {}]   ;;  %s1935_s7 = inlined_call_operand.hbm [shape: f32[32,40], index: 7, kind: input, shape index: {}]   ;;  %s1936_s8 = inlined_call_operand.hbm [shape: f32[32,40], index: 8, kind: input, shape index: {}]   ;;  %s1937_s9 = inlined_call_operand.hbm [shape: f32[1,40], index: 9, kind: input, shape index: {}]   ;;  %s1938_s10 = inlined_call_operand.vmem [shape: f32[40,12], index: 10, kind: input, shape index: {}]   ;;  %s1939_s11 = inlined_call_operand.vmem [shape: f32[32,12], index: 11, kind: input, shape index: {}]   ;;  %s1940_s12 = inlined_call_operand.vmem [shape: f32[1,12], index: 12, kind: input, shape index: {}]   ;;  %s1941_s13 = inlined_call_operand.hbm [shape: f32[8,12], index: 13, kind: output, shape index: {}]  }
   0x1   :  { %19 = vsyncpa [#allocation6], 0 }
   0x2   :  { %20 = vsyncpa [#allocation9], 0 }
   0x3   :  { %21 = vsyncpa [#allocation12], 0 }
   0x4   :  { %22 = vsyncpa [#allocation15], 0  ;;  %s39_s27 = sshll.u32 %s1929_s1, 4  ;;  %s40_s27 = int_to_ptr.hbm [resolvable:$true] %s39_s27 }
   0x5   :  { %23 = vsyncpa [#allocation4], 0  ;;  %s1648_s28 = smov [#allocation5]   ;;  %s63_s15 = sshll.u32 %s1931_s3, 4  ;;  %s64_s15 = int_to_ptr.hbm [resolvable:$true] %s63_s15 }
   0x6   :  { %s41_s29 = sshll.u32 %s1648_s28, 4  ;;  %s1649_s16 = smov 128   ;;  %s42_s29 = int_to_ptr.vmem [resolvable:$true] %s41_s29 }
   0x7   :  { %s1650_s17 = smov 8   ;;  %s1651_s18 = smov [#allocation8]  }
   0x8   :  { %47 = dma.hbm_to_vmem [thread:$0]  %s40_s27, 768, %s42_s29, [#allocation6], %s1649_s16, %s1649_s16, %s1650_s17  }
   0x9   :  { %s65_s19 = sshll.u32 %s1651_s18, 4  ;;  %s1652_s1 = smov 1024   ;;  %s66_s19 = int_to_ptr.vmem [resolvable:$true] %s65_s19 }
   0xa   :  { %s1653_s20 = smov 64   ;;  %s91_s23 = sshll.u32 %s1935_s7, 4  ;;  %s92_s23 = int_to_ptr.hbm [resolvable:$true] %s91_s23 }
   0xb   :  { %71 = dma.hbm_to_vmem [thread:$0]  %s64_s15, 8192, %s66_s19, [#allocation9], %s1652_s1, %s1652_s1, %s1653_s20  }
   0xc   :  { %s1654_s3 = smov [#allocation11]   ;;  %s29_s27 = sshll.u32 %s1928_s0, 4  ;;  %s30_s27 = int_to_ptr.hbm [resolvable:$true] %s29_s27 }
   0xd   :  { %s93_s24 = sshll.u32 %s1654_s3, 4  ;;  %s1655_s28 = smov [#allocation2]   ;;  %s94_s24 = int_to_ptr.vmem [resolvable:$true] %s93_s24 }
   0xe   :  { %99 = dma.hbm_to_vmem [thread:$0]  %s92_s23, 512, %s94_s24, [#allocation12], %s1649_s16, %s1649_s16, %s1650_s17  }
   0xf   :  { %s31_s29 = sshll.u32 %s1655_s28, 4  ;;  %s53_s15 = sshll.u32 %s1930_s2, 4  ;;  %s32_s29 = int_to_ptr.vmem [resolvable:$true] %s31_s29  ;;  %s54_s15 = int_to_ptr.hbm [resolvable:$true] %s53_s15 }
  0x10   :  { %34 = dma.hbm_to_vmem [thread:$0]  %s30_s27, 128, %s32_s29, [#allocation3]  }
  0x11   :  { %s79_s19 = sshll.u32 %s1933_s5, 4  ;;  %s1656_s1 = smov [#allocation7]   ;;  %s80_s19 = int_to_ptr.hbm [resolvable:$true] %s79_s19 }
  0x12   :  { %s55_s0 = sshll.u32 %s1656_s1, 4  ;;  %s1657_s21 = smov [#allocation10]   ;;  %s56_s0 = int_to_ptr.vmem [resolvable:$true] %s55_s0 }
  0x13   :  { %58 = dma.hbm_to_vmem [thread:$0]  %s54_s15, 16, %s56_s0, [#allocation6]  }
  0x14   :  { %s81_s22 = sshll.u32 %s1657_s21, 4  ;;  %s104_s24 = sshll.u32 %s1936_s8, 4  ;;  %s82_s22 = int_to_ptr.vmem [resolvable:$true] %s81_s22  ;;  %s105_s24 = int_to_ptr.hbm [resolvable:$true] %s104_s24 }
  0x15   :  { %84 = dma.hbm_to_vmem [thread:$0]  %s80_s19, 128, %s82_s22, [#allocation9]  }
  0x16   :  { %s118_s26 = sshll.u32 %s1937_s9, 4  ;;  %s1658_s27 = smov [#allocation13]   ;;  %s119_s26 = int_to_ptr.hbm [resolvable:$true] %s118_s26 }
  0x17   :  { %s106_s5 = sshll.u32 %s1658_s27, 4  ;;  %s1659_s28 = smov [#allocation14]   ;;  %s107_s5 = int_to_ptr.vmem [resolvable:$true] %s106_s5 }
  0x18   :  { %112 = dma.hbm_to_vmem [thread:$0]  %s105_s24, 512, %s107_s5, [#allocation12], %s1649_s16, %s1649_s16, %s1650_s17  }
  0x19   :  { %s120_s29 = sshll.u32 %s1659_s28, 4  ;;  %s121_s29 = int_to_ptr.vmem [resolvable:$true] %s120_s29 }
  0x1a   :  { %123 = dma.hbm_to_vmem [thread:$0]  %s119_s26, 16, %s121_s29, [#allocation15]  }
  0x1b   :  { %1636 = dma.done.wait [#allocation3], 128  }
  0x1c   :  { %1637 = vsyncadd [#allocation3], 4294967168 }
  0x1d   :  { %1638 = dma.done.wait [#allocation6], 784  }
  0x1e   :  { %1639 = vsyncadd [#allocation6], 4294966512 }
  0x1f   :  { %1640 = dma.done.wait [#allocation9], 8320  }
  0x20   :  { %1641 = vsyncadd [#allocation9], 4294958976 }
  0x21   :  { %1642 = dma.done.wait [#allocation12], 1024  }
  0x22   :  { %1643 = vsyncadd [#allocation12], 4294966272 }
  0x23   :  { %1644 = dma.done.wait [#allocation15], 16  }
  0x24   :  { %1645 = vsyncadd [#allocation15], 4294967280  ;;  %v168_v0 = vld [vmem:[#allocation5 + $0x28] sm:$0xff]  ;;  %v162_v1 = vld [vmem:[#allocation2] sm:$0xff]  ;;  %s1660_s8 = smov 80   ;;  %vm173_vm0 = vcmask 392192  }
  0x25   :  { %v167_v2 = vld [vmem:[#allocation5 + $0x20] sm:$0xff]  ;;  %187 = vmatpush.msra.mxu0 %v168_v0  ;;  %270 = vrot.lane.b32.xlu0 %v162_v1, %s1660_s8  ;;  %v166_v3 = vld [vmem:[#allocation5 + $0x18] sm:$0xff]  ;;  %v165_v7 = vld [vmem:[#allocation5 + $0x10] sm:$0xff]  ;;  %vm272_vm1 = vcmask 64512   ;;  %vm435_vm2 = vcmask 523264   ;;  %vm629_vm7 = vcmask 261120  }
  0x26   :  { %v262_v4 = vld [vmem:[%s1932_s4] sm:$0xff]  ;;  %v263_v5 = vld [vmem:[%s1932_s4 + $0x8] sm:$0xff]  ;;  %v164_v8 = vld [vmem:[#allocation5 + $0x8] sm:$0xff]  ;;  %s1280_s27 = sshll.u32 %s1941_s13, 4  ;;  %s1281_s27 = int_to_ptr.hbm [resolvable:$true] %s1280_s27 }
  0x27   :  { %188 = vmatpush.msra.mxu0 %v167_v2  ;;  %290 = vmatpush.msra.mxu1 %v262_v4  ;;  %v266_v6 = vld [vmem:[%s1932_s4 + $0x20] sm:$0xff]  ;;  %v163_v9 = vld [vmem:[#allocation5] sm:$0xff]  ;;  %v264_v10 = vld [vmem:[%s1932_s4 + $0x10] sm:$0xff] }
  0x28   :  { %310 = vmatpush.msra.mxu3 %v263_v5  ;;  %370 = vmatpush.msra.mxu2 %v266_v6  ;;  %v265_v11 = vld [vmem:[%s1932_s4 + $0x18] sm:$0xff]  ;;  %v255_v13 = vld [vmem:[#allocation8 + $0x1c8] sm:$0xff]  ;;  %v268_v27 = vld [vmem:[%s1932_s4 + $0x30] sm:$0xff] }
  0x29   :  { %189 = vmatpush.msra.mxu0 %v166_v3  ;;  %v269_v12 = vld [vmem:[%s1932_s4 + $0x38] sm:$0xff]  ;;  %350 = vmatpush.msrb.mxu1 %v265_v11  ;;  %v247_v14 = vld [vmem:[#allocation8 + $0x188] sm:$0xff]  ;;  %v256_v35 = vld [vmem:[#allocation8 + $0x1d0] sm:$0xff] }
  0x2a   :  { %330 = vmatpush.msrb.mxu3 %v264_v10  ;;  %430 = vmatpush.msrb.mxu2 %v269_v12  ;;  %v239_v15 = vld [vmem:[#allocation8 + $0x148] sm:$0xff]  ;;  %v257_v28 = vld [vmem:[#allocation8 + $0x1d8] sm:$0xff]  ;;  %v254_v34 = vld [vmem:[#allocation8 + $0x1c0] sm:$0xff] }
  0x2b   :  { %190 = vmatpush.msra.mxu0 %v165_v7  ;;  %v231_v16 = vld [vmem:[#allocation8 + $0x108] sm:$0xff]  ;;  %v249_v29 = vld [vmem:[#allocation8 + $0x198] sm:$0xff]  ;;  %v246_v37 = vld [vmem:[#allocation8 + $0x180] sm:$0xff] }
  0x2c   :  { %v223_v17 = vld [vmem:[#allocation8 + $0xc8] sm:$0xff]  ;;  %v241_v31 = vld [vmem:[#allocation8 + $0x158] sm:$0xff]  ;;  %v248_v39 = vld [vmem:[#allocation8 + $0x190] sm:$0xff] }
  0x2d   :  { %191 = vmatpush.msra.mxu0 %v164_v8  ;;  %v215_v18 = vld [vmem:[#allocation8 + $0x88] sm:$0xff]  ;;  %v233_v36 = vld [vmem:[#allocation8 + $0x118] sm:$0xff]  ;;  %v238_v41 = vld [vmem:[#allocation8 + $0x140] sm:$0xff] }
  0x2e   :  { %v207_v19 = vld [vmem:[#allocation8 + $0x48] sm:$0xff]  ;;  %v225_v40 = vld [vmem:[#allocation8 + $0xd8] sm:$0xff]  ;;  %v240_v42 = vld [vmem:[#allocation8 + $0x150] sm:$0xff] }
  0x2f   :  { %192 = vmatpush.msra.mxu0 %v163_v9  ;;  %v199_v20 = vld [vmem:[#allocation8 + $0x8] sm:$0xff]  ;;  %v217_v43 = vld [vmem:[#allocation8 + $0x98] sm:$0xff]  ;;  %v230_v44 = vld [vmem:[#allocation8 + $0x100] sm:$0xff] }
  0x30   :  { %1294 = vmatmul.msk.f32.vlgmr.msra.gmra.mxu0 %vm173_vm0, %v162_v1  ;;  %v259_v21 = vld [vmem:[#allocation8 + $0x1e8] sm:$0xff]  ;;  %v232_v45 = vld [vmem:[#allocation8 + $0x110] sm:$0xff]  ;;  %v222_v46 = vld [vmem:[#allocation8 + $0xc0] sm:$0xff] }
  0x31   :  { %467 = vmatpush.msrb.mxu0 %v255_v13  ;;  %v251_v22 = vld [vmem:[#allocation8 + $0x1a8] sm:$0xff]  ;;  %v224_v47 = vld [vmem:[#allocation8 + $0xd0] sm:$0xff]  ;;  %v209_v48 = vld [vmem:[#allocation8 + $0x58] sm:$0xff] }
  0x32   :  { %v243_v23 = vld [vmem:[#allocation8 + $0x168] sm:$0xff]  ;;  %v214_v49 = vld [vmem:[#allocation8 + $0x80] sm:$0xff]  ;;  %v216_v50 = vld [vmem:[#allocation8 + $0x90] sm:$0xff] }
  0x33   :  { %468 = vmatpush.msrb.mxu0 %v247_v14  ;;  %v267_v24 = vld [vmem:[%s1932_s4 + $0x28] sm:$0xff]  ;;  %v201_v51 = vld [vmem:[#allocation8 + $0x18] sm:$0xff]  ;;  %v206_v53 = vld [vmem:[#allocation8 + $0x40] sm:$0xff]  ;;  %s1663_s4 = smov [#allocation16]  }
  0x34   :  { %v235_v25 = vld [vmem:[#allocation8 + $0x128] sm:$0xff]  ;;  %v1347_v52 = vld [vmem:[#allocation7] ss:$0 sm:$0xff]  ;;  %v208_v55 = vld [vmem:[#allocation8 + $0x50] sm:$0xff]  ;;  %s1278_s2 = sshll.u32 %s1663_s4, 4  ;;  %s1279_s2 = int_to_ptr.vmem [resolvable:$true] %s1278_s2 }
  0x35   :  { %469 = vmatpush.msrb.mxu0 %v239_v15  ;;  %v227_v30 = vld [vmem:[#allocation8 + $0xe8] sm:$0xff]  ;;  %v261_v54 = vld [vmem:[#allocation8 + $0x1f8] sm:$0xff]  ;;  %v198_v56 = vld [vmem:[#allocation8] sm:$0xff] }
  0x36   :  { %v219_v32 = vld [vmem:[#allocation8 + $0xa8] sm:$0xff]  ;;  %v253_v57 = vld [vmem:[#allocation8 + $0x1b8] sm:$0xff]  ;;  %v200_v59 = vld [vmem:[#allocation8 + $0x10] sm:$0xff] }
  0x37   :  { %470 = vmatpush.msrb.mxu0 %v231_v16  ;;  %v211_v33 = vld [vmem:[#allocation8 + $0x68] sm:$0xff]  ;;  %v258_v60 = vld [vmem:[#allocation8 + $0x1e0] sm:$0xff]  ;;  %v260_v62 = vld [vmem:[#allocation8 + $0x1f0] sm:$0xff] }
  0x38   :  { %v203_v38 = vld [vmem:[#allocation8 + $0x28] sm:$0xff]  ;;  %v245_v63 = vld [vmem:[#allocation8 + $0x178] sm:$0xff]  ;;  %v250_v0 = vld [vmem:[#allocation8 + $0x1a0] sm:$0xff] }
  0x39   :  { %471 = vmatpush.msrb.mxu0 %v223_v17  ;;  %v252_v1 = vld [vmem:[#allocation8 + $0x1b0] sm:$0xff]  ;;  %v237_v2 = vld [vmem:[#allocation8 + $0x138] sm:$0xff]  ;;  %v242_v3 = vld [vmem:[#allocation8 + $0x160] sm:$0xff] }
  0x3a   :  { %v244_v4 = vld [vmem:[#allocation8 + $0x170] sm:$0xff]  ;;  %v229_v5 = vld [vmem:[#allocation8 + $0xf8] sm:$0xff]  ;;  %v234_v6 = vld [vmem:[#allocation8 + $0x120] sm:$0xff] }
  0x3b   :  { %472 = vmatpush.msrb.mxu0 %v215_v18  ;;  %v236_v7 = vld [vmem:[#allocation8 + $0x130] sm:$0xff]  ;;  %v226_v9 = vld [vmem:[#allocation8 + $0xe0] sm:$0xff]  ;;  %v221_v11 = vld [vmem:[#allocation8 + $0xb8] sm:$0xff] }
  0x3c   :  { %v228_v10 = vld [vmem:[#allocation8 + $0xf0] sm:$0xff]  ;;  %v218_v12 = vld [vmem:[#allocation8 + $0xa0] sm:$0xff]  ;;  %v213_v14 = vld [vmem:[#allocation8 + $0x78] sm:$0xff] }
  0x3d   :  { %473 = vmatpush.msrb.mxu0 %v207_v19  ;;  %v220_v13 = vld [vmem:[#allocation8 + $0xb0] sm:$0xff]  ;;  %v210_v15 = vld [vmem:[#allocation8 + $0x60] sm:$0xff]  ;;  %v205_v18 = vld [vmem:[#allocation8 + $0x38] sm:$0xff] }
  0x3e   :  { %v628_v16 = vld [vmem:[%s1934_s6 + $0x18] sm:$0xff]  ;;  %v212_v17 = vld [vmem:[#allocation8 + $0x70] sm:$0xff] }
  0x3f   :  { %474 = vmatpush.msrb.mxu0 %v199_v20  ;;  %v202_v19 = vld [vmem:[#allocation8 + $0x20] sm:$0xff]  ;;  %v627_v20 = vld [vmem:[%s1934_s6 + $0x10] sm:$0xff] }
  0x41   :  { %547 = vmatpush.msra.mxu0 %v259_v21  ;;  %v204_v21 = vld [vmem:[#allocation8 + $0x30] sm:$0xff] }
  0x43   :  { %548 = vmatpush.msra.mxu0 %v251_v22  ;;  %v626_v22 = vld [vmem:[%s1934_s6 + $0x8] sm:$0xff] }
  0x45   :  { %549 = vmatpush.msra.mxu0 %v243_v23  ;;  %v625_v23 = vld [vmem:[%s1934_s6] sm:$0xff]  ;;  %s1662_s6 = smov 32  }
  0x47   :  { %550 = vmatpush.msra.mxu0 %v235_v25 }
  0x49   :  { %551 = vmatpush.msra.mxu0 %v227_v30 }
  0x4b   :  { %552 = vmatpush.msra.mxu0 %v219_v32 }
  0x4d   :  { %553 = vmatpush.msra.mxu0 %v211_v33 }
  0x4f   :  { %554 = vmatpush.msra.mxu0 %v203_v38 }
  0x97   :  { %v271_v26 = vpop.permute.xlu0 %270 }
  0x98   :  { %1295 = vmatmul.msk.f32.vlgmr.msra.gmra.mxu1 %vm272_vm1, %v271_v26  ;;  %1296 = vmatmul.msk.f32.vlgmr.msra.gmra.mxu3 %vm272_vm1, %v271_v26 }
  0x99   :  { %1299 = vmatmul.msk.f32.vlgmr.msra.gmra.mxu2 %vm272_vm1, %v271_v26  ;;  %390 = vmatpush.msra.mxu3 %v267_v24  ;;  %v1661_v24 = vmov 0.0  }
  0x9a   :  { %410 = vmatpush.msra.mxu1 %v268_v27  ;;  %507 = vmatpush.msra.mxu2 %v257_v28 }
  0x9c   :  { %508 = vmatpush.msra.mxu2 %v249_v29 }
  0x9e   :  { %509 = vmatpush.msra.mxu2 %v241_v31  ;;  %v599_v31 = vld [vmem:[#allocation10] sm:$0xff] }
  0xa0   :  { %1297 = vmatmul.msk.f32.vlgmr.msrb.gmra.mxu3 %vm272_vm1, %v271_v26  ;;  %1298 = vmatmul.msk.f32.vlgmr.msrb.gmra.mxu1 %vm272_vm1, %v271_v26 }
  0xa1   :  { %1302 = vmatmul.msk.f32.vlgmr.msrb.gmra.mxu2 %vm272_vm1, %v271_v26  ;;  %447 = vmatpush.msrb.mxu3 %v254_v34  ;;  %v602_v34 = vperm.slane %v599_v31, 1 }
  0xa2   :  { %487 = vmatpush.msrb.mxu1 %v256_v35  ;;  %510 = vmatpush.msra.mxu2 %v233_v36  ;;  %v603_v35 = vperm.slane %v599_v31, 2 }
  0xa3   :  { %448 = vmatpush.msrb.mxu3 %v246_v37 }
  0xa4   :  { %488 = vmatpush.msrb.mxu1 %v248_v39  ;;  %511 = vmatpush.msra.mxu2 %v225_v40 }
  0xa5   :  { %449 = vmatpush.msrb.mxu3 %v238_v41 }
  0xa6   :  { %489 = vmatpush.msrb.mxu1 %v240_v42  ;;  %512 = vmatpush.msra.mxu2 %v217_v43  ;;  %v604_v43 = vperm.slane %v599_v31, 3 }
  0xa7   :  { %450 = vmatpush.msrb.mxu3 %v230_v44 }
  0xa8   :  { %490 = vmatpush.msrb.mxu1 %v232_v45  ;;  %1300 = vmatmul.msk.f32.vlgmr.msra.gmra.mxu3 %vm272_vm1, %v271_v26 }
  0xa9   :  { %1301 = vmatmul.msk.f32.vlgmr.msra.gmra.mxu1 %vm272_vm1, %v271_v26  ;;  %451 = vmatpush.msrb.mxu3 %v222_v46  ;;  %v606_v46 = vperm.slane %v599_v31, 5 }
  0xaa   :  { %491 = vmatpush.msrb.mxu1 %v224_v47  ;;  %513 = vmatpush.msra.mxu2 %v209_v48  ;;  %v607_v47 = vperm.slane %v599_v31, 6 }
  0xab   :  { %452 = vmatpush.msrb.mxu3 %v214_v49 }
  0xac   :  { %492 = vmatpush.msrb.mxu1 %v216_v50  ;;  %514 = vmatpush.msra.mxu2 %v201_v51 }
  0xad   :  { %v194_v58 = vpop.f32.mrf.mxu0  ;;  %453 = vmatpush.msrb.mxu3 %v206_v53 }
  0xae   :  { %587 = vmatpush.msrb.mxu2 %v261_v54  ;;  %v195_v61 = vadd.f32 %v1347_v52, %v194_v58  ;;  %493 = vmatpush.msrb.mxu1 %v208_v55  ;;  %v605_v55 = vperm.slane %v599_v31, 4  ;;  %v608_v58 = vperm.slane %v599_v31, 7 }
  0xaf   :  { %454 = vmatpush.msrb.mxu3 %v198_v56 }
  0xb0   :  { %588 = vmatpush.msrb.mxu2 %v253_v57  ;;  %1350 = vtanh.f32 %v195_v61  ;;  %494 = vmatpush.msrb.mxu1 %v200_v59 }
  0xb1   :  { %527 = vmatpush.msra.mxu3 %v258_v60 }
  0xb2   :  { %567 = vmatpush.msra.mxu1 %v260_v62  ;;  %589 = vmatpush.msrb.mxu2 %v245_v63  ;;  %v601_v63 = vperm.slane %v599_v31, 0 }
  0xb3   :  { %528 = vmatpush.msra.mxu3 %v250_v0 }
  0xb4   :  { %568 = vmatpush.msra.mxu1 %v252_v1  ;;  %590 = vmatpush.msrb.mxu2 %v237_v2 }
  0xb5   :  { %529 = vmatpush.msra.mxu3 %v242_v3 }
  0xb6   :  { %569 = vmatpush.msra.mxu1 %v244_v4  ;;  %591 = vmatpush.msrb.mxu2 %v229_v5  ;;  %v1800_v8 = vpop.eup %1350 }
  0xb7   :  { %530 = vmatpush.msra.mxu3 %v234_v6  ;;  %1304 = vmatmul.msk.f32.vlgmr.msrb.gmra.mxu0 %vm435_vm2, %v1800_v8 }
  0xb8   :  { %570 = vmatpush.msra.mxu1 %v236_v7  ;;  %1303 = vmatmul.msk.f32.vlgmr.msrb.gmra.mxu3 %vm435_vm2, %v1800_v8 }
  0xb9   :  { %1305 = vmatmul.msk.f32.vlgmr.msrb.gmra.mxu1 %vm435_vm2, %v1800_v8  ;;  %1306 = vmatmul.msk.f32.vlgmr.msra.gmra.mxu2 %vm435_vm2, %v1800_v8 }
  0xba   :  { %531 = vmatpush.msra.mxu3 %v226_v9  ;;  %571 = vmatpush.msra.mxu1 %v228_v10 }
  0xbb   :  { %592 = vmatpush.msrb.mxu2 %v221_v11  ;;  %708 = vmatpush.msrb.mxu0 %v628_v16 }
  0xbc   :  { %532 = vmatpush.msra.mxu3 %v218_v12  ;;  %572 = vmatpush.msra.mxu1 %v220_v13 }
  0xbd   :  { %593 = vmatpush.msrb.mxu2 %v213_v14  ;;  %709 = vmatpush.msrb.mxu0 %v627_v20 }
  0xbe   :  { %533 = vmatpush.msra.mxu3 %v210_v15  ;;  %573 = vmatpush.msra.mxu1 %v212_v17 }
  0xbf   :  { %594 = vmatpush.msrb.mxu2 %v205_v18  ;;  %710 = vmatpush.msrb.mxu0 %v626_v22 }
  0xc0   :  { %534 = vmatpush.msra.mxu3 %v202_v19  ;;  %574 = vmatpush.msra.mxu1 %v204_v21 }
  0xc1   :  { %1307 = vmatmul.msk.f32.vlgmr.msra.gmra.mxu3 %vm435_vm2, %v1800_v8  ;;  %1308 = vmatmul.msk.f32.vlgmr.msra.gmra.mxu0 %vm435_vm2, %v1800_v8 }
  0xc2   :  { %1309 = vmatmul.msk.f32.vlgmr.msra.gmra.mxu1 %vm435_vm2, %v1800_v8  ;;  %1310 = vmatmul.msk.f32.vlgmr.msrb.gmra.mxu2 %vm435_vm2, %v1800_v8 }
  0xc3   :  { %645 = vmatpush.msrb.mxu3 %v628_v16  ;;  %711 = vmatpush.msrb.mxu0 %v625_v23 }
  0xc4   :  { %771 = vmatpush.msrb.mxu1 %v628_v16  ;;  %834 = vmatpush.msra.mxu2 %v628_v16 }
  0xc5   :  { %646 = vmatpush.msrb.mxu3 %v627_v20  ;;  %960 = vmatpush.msra.mxu0 %v628_v16 }
  0xc6   :  { %772 = vmatpush.msrb.mxu1 %v627_v20  ;;  %835 = vmatpush.msra.mxu2 %v627_v20 }
  0xc7   :  { %647 = vmatpush.msrb.mxu3 %v626_v22  ;;  %961 = vmatpush.msra.mxu0 %v627_v20 }
  0xc8   :  { %773 = vmatpush.msrb.mxu1 %v626_v22  ;;  %836 = vmatpush.msra.mxu2 %v626_v22 }
  0xc9   :  { %648 = vmatpush.msrb.mxu3 %v625_v23  ;;  %962 = vmatpush.msra.mxu0 %v626_v22 }
  0xca   :  { %649 = vmatmul.f32.vlgmr.msrb.gmra.mxu3 %v1661_v24  ;;  %774 = vmatpush.msrb.mxu1 %v625_v23 }
  0xcb   :  { %837 = vmatpush.msra.mxu2 %v625_v23  ;;  %897 = vmatpush.msra.mxu3 %v628_v16 }
  0xcc   :  { %1023 = vmatpush.msra.mxu1 %v628_v16  ;;  %963 = vmatpush.msra.mxu0 %v625_v23 }
  0xcd   :  { %898 = vmatpush.msra.mxu3 %v627_v20  ;;  %1086 = vmatpush.msrb.mxu2 %v628_v16 }
  0xce   :  { %1024 = vmatpush.msra.mxu1 %v627_v20 }
  0xcf   :  { %899 = vmatpush.msra.mxu3 %v626_v22  ;;  %1087 = vmatpush.msrb.mxu2 %v627_v20 }
  0xd0   :  { %1025 = vmatpush.msra.mxu1 %v626_v22 }
  0xd1   :  { %900 = vmatpush.msra.mxu3 %v625_v23  ;;  %1088 = vmatpush.msrb.mxu2 %v626_v22 }
  0xd2   :  { %1026 = vmatpush.msra.mxu1 %v625_v23 }
  0xd3   :  { %1089 = vmatpush.msrb.mxu2 %v625_v23 }
 0x115   :  { %v292_v25 = vpop.f32.mrf.mxu1 }
 0x11b   :  { %v312_v26 = vpop.f32.mrf.mxu3 }
 0x11c   :  { %v372_v29 = vpop.f32.mrf.mxu2 }
 0x11d   :  { %v352_v27 = vpop.f32.mrf.mxu1 }
 0x123   :  { %v332_v28 = vpop.f32.mrf.mxu3 }
 0x124   :  { %v432_v33 = vpop.f32.mrf.mxu2 }
 0x126   :  { %v412_v30 = vpop.f32.mrf.mxu1 }
 0x12b   :  { %v392_v32 = vpop.f32.mrf.mxu3 }
 0x134   :  { %v476_v36 = vpop.f32.mrf.mxu0 }
 0x135   :  { %v477_v38 = vadd.f32 %v476_v36, %v312_v26 }
 0x136   :  { %v496_v37 = vpop.f32.mrf.mxu1 }
 0x137   :  { %v497_v39 = vadd.f32 %v496_v37, %v332_v28  ;;  %v1830_v40 = vadd.f32 %v602_v34, %v477_v38 }
 0x139   :  { %v1832_v41 = vadd.f32 %v603_v35, %v497_v39 }
 0x13b   :  { %v456_v42 = vpop.f32.mrf.mxu3 }
 0x13c   :  { %v516_v44 = vpop.f32.mrf.mxu2  ;;  %v457_v62 = vadd.f32 %v456_v42, %v292_v25 }
 0x13d   :  { %v517_v45 = vadd.f32 %v516_v44, %v352_v27 }
 0x13e   :  { %v556_v48 = vpop.f32.mrf.mxu0  ;;  %v617_v1 = vadd.f32 %v601_v63, %v457_v62 }
 0x13f   :  { %v576_v49 = vpop.f32.mrf.mxu1  ;;  %v557_v50 = vadd.f32 %v556_v48, %v392_v32  ;;  %v1834_v52 = vadd.f32 %v604_v43, %v517_v45 }
 0x140   :  { %v577_v51 = vadd.f32 %v576_v49, %v412_v30 }
 0x141   :  { %v1836_v53 = vadd.f32 %v606_v46, %v557_v50 }
 0x142   :  { %v1838_v54 = vadd.f32 %v607_v47, %v577_v51 }
 0x144   :  { %v536_v56 = vpop.f32.mrf.mxu3 }
 0x145   :  { %v537_v57 = vadd.f32 %v536_v56, %v372_v29  ;;  %v596_v59 = vpop.f32.mrf.mxu2 }
 0x146   :  { %v597_v60 = vadd.f32 %v596_v59, %v432_v33 }
 0x147   :  { %v1840_v61 = vadd.f32 %v605_v55, %v537_v57 }
 0x148   :  { %v1842_v0 = vadd.f32 %v608_v58, %v597_v60 }
 0x14d   :  { %v650_v2 = vpop.f32.mrf.mxu3 }
 0x14e   :  { %v653_v3 = vadd.f32 %v650_v2, %v617_v1 }
 0x150   :  { %1352 = vtanh.f32 %v653_v3  ;;  %v1311_v5 = vmul.f32 -1.442695, %v653_v3 }
 0x152   :  { %1354 = vpow2.f32 %v1311_v5 }
 0x156   :  { %v1353_v4 = vpop.eup %1352 }
 0x157   :  { %676 = vrot.lane.b32.xlu0 %v1353_v4, %s1653_s20 }
 0x158   :  { %v1355_v6 = vpop.eup %1354 }
 0x159   :  { %v657_v7 = vadd.f32 1.0, %v1355_v6 }
 0x15b   :  { %1356 = vrcp.f32 %v657_v7  ;;  %v669_v14 = vand.u32 2147483648, %v657_v7  ;;  %vm663_vm4 = vweird.f32 %v657_v7  ;;  %v667_v15 = vand.u32 2147483647, %v657_v7 }
 0x15d   :  { %v670_v17 = vor.u32 1.1754944e-38, %v669_v14  ;;  %vm668_vm6 = vcmp.eq.f32.partialorder %v667_v15, 8.507059e+37 }
 0x161   :  { %v1357_v9 = vpop.eup %1356 }
 0x162   :  { %v659_v10 = vmul.f32 %v1357_v9, %v657_v7  ;;  %vm664_vm3 = vweird.f32 %v1357_v9 }
 0x163   :  { %vm665_vm5 = vmor %vm663_vm4, %vm664_vm3 }
 0x164   :  { %v660_v11 = vsub.f32 1.0, %v659_v10 }
 0x166   :  { %v661_v12 = vmul.f32 %v1357_v9, %v660_v11 }
 0x168   :  { %v662_v13 = vadd.f32 %v1357_v9, %v661_v12 }
 0x16a   :  { %v666_v16 = vsel %vm665_vm5, %v1357_v9, %v662_v13 }
 0x16b   :  { %v671_v19 = vsel %vm668_vm6, %v670_v17, %v666_v16 }
 0x16c   :  { %v674_v21 = vmul.f32 0.0, %v671_v19 }
 0x1c9   :  { %v677_v18 = vpop.permute.xlu0 %676 }
 0x1ca   :  { %v679_v20 = vmul.f32 %v677_v18, %v671_v19 }
 0x1cc   :  { %681 = vrot.lane.b32.xlu1 %v679_v20, %s1662_s6 }
 0x23e   :  { %v682_v22 = vpop.permute.xlu1 %681 }
 0x23f   :  { %v684_v23 = vadd.f32 %v682_v22, %v674_v21 }
 0x241   :  { %1358 = vtanh.f32 %v684_v23 }
 0x247   :  { %v1359_v24 = vpop.eup %1358 }
 0x248   :  { %687 = vrot.lane.b32.xlu1 %v1359_v24, %s1653_s20 }
 0x2ba   :  { %v688_v25 = vpop.permute.xlu1 %687 }
 0x2bb   :  { %v690_v26 = vmul.f32 %v688_v25, %v671_v19 }
 0x2bd   :  { %692 = vrot.lane.b32.xlu2 %v690_v26, %s1662_s6 }
 0x317   :  { %v693_v27 = vpop.permute.xlu2 %692 }
 0x318   :  { %1312 = vmatmul.msk.f32.vlgmr.msrb.gmra.mxu0 %vm629_vm7, %v693_v27 }
 0x395   :  { %v713_v28 = vpop.f32.mrf.mxu0 }
 0x396   :  { %v716_v29 = vadd.f32 %v713_v28, %v1830_v40 }
 0x398   :  { %1360 = vtanh.f32 %v716_v29  ;;  %v1313_v31 = vmul.f32 -1.442695, %v716_v29 }
 0x39a   :  { %1362 = vpow2.f32 %v1313_v31 }
 0x39e   :  { %v1361_v30 = vpop.eup %1360 }
 0x39f   :  { %739 = vrot.lane.b32.xlu2 %v1361_v30, %s1653_s20 }
 0x3a0   :  { %v1363_v32 = vpop.eup %1362 }
 0x3a1   :  { %v720_v33 = vadd.f32 1.0, %v1363_v32 }
 0x3a3   :  { %1364 = vrcp.f32 %v720_v33  ;;  %v732_v39 = vand.u32 2147483648, %v720_v33  ;;  %vm726_vm9 = vweird.f32 %v720_v33  ;;  %v730_v42 = vand.u32 2147483647, %v720_v33 }
 0x3a5   :  { %v733_v43 = vor.u32 1.1754944e-38, %v732_v39  ;;  %vm731_vm11 = vcmp.eq.f32.partialorder %v730_v42, 8.507059e+37 }
 0x3a9   :  { %v1365_v34 = vpop.eup %1364 }
 0x3aa   :  { %v722_v35 = vmul.f32 %v1365_v34, %v720_v33  ;;  %vm727_vm8 = vweird.f32 %v1365_v34 }
 0x3ab   :  { %vm728_vm10 = vmor %vm726_vm9, %vm727_vm8 }
 0x3ac   :  { %v723_v36 = vsub.f32 1.0, %v722_v35 }
 0x3ae   :  { %v724_v37 = vmul.f32 %v1365_v34, %v723_v36 }
 0x3b0   :  { %v725_v38 = vadd.f32 %v1365_v34, %v724_v37 }
 0x3b2   :  { %v729_v40 = vsel %vm728_vm10, %v1365_v34, %v725_v38 }
 0x3b3   :  { %v734_v45 = vsel %vm731_vm11, %v733_v43, %v729_v40 }
 0x3b4   :  { %v737_v47 = vmul.f32 %v734_v45, %v684_v23 }
 0x3f9   :  { %v740_v44 = vpop.permute.xlu2 %739 }
 0x3fa   :  { %v742_v46 = vmul.f32 %v740_v44, %v734_v45 }
 0x3fc   :  { %744 = vrot.lane.b32.xlu0 %v742_v46, %s1662_s6 }
 0x46e   :  { %v745_v48 = vpop.permute.xlu0 %744 }
 0x46f   :  { %v747_v49 = vadd.f32 %v745_v48, %v737_v47 }
 0x471   :  { %1366 = vtanh.f32 %v747_v49 }
 0x477   :  { %v1367_v50 = vpop.eup %1366 }
 0x478   :  { %750 = vrot.lane.b32.xlu1 %v1367_v50, %s1653_s20 }
 0x4ea   :  { %v751_v51 = vpop.permute.xlu1 %750 }
 0x4eb   :  { %v753_v55 = vmul.f32 %v751_v51, %v734_v45 }
 0x4ed   :  { %755 = vrot.lane.b32.xlu2 %v753_v55, %s1662_s6 }
 0x547   :  { %v756_v56 = vpop.permute.xlu2 %755 }
 0x548   :  { %1314 = vmatmul.msk.f32.vlgmr.msrb.gmra.mxu1 %vm629_vm7, %v756_v56 }
 0x5c5   :  { %v776_v57 = vpop.f32.mrf.mxu1 }
 0x5c6   :  { %v779_v58 = vadd.f32 %v776_v57, %v1832_v41 }
 0x5c8   :  { %1368 = vtanh.f32 %v779_v58  ;;  %v1315_v60 = vmul.f32 -1.442695, %v779_v58 }
 0x5ca   :  { %1370 = vpow2.f32 %v1315_v60 }
 0x5ce   :  { %v1369_v59 = vpop.eup %1368 }
 0x5cf   :  { %802 = vrot.lane.b32.xlu0 %v1369_v59, %s1653_s20 }
 0x5d0   :  { %v1371_v62 = vpop.eup %1370 }
 0x5d1   :  { %v783_v63 = vadd.f32 1.0, %v1371_v62 }
 0x5d3   :  { %1372 = vrcp.f32 %v783_v63  ;;  %v795_v6 = vand.u32 2147483648, %v783_v63  ;;  %vm789_vm13 = vweird.f32 %v783_v63  ;;  %v793_v7 = vand.u32 2147483647, %v783_v63 }
 0x5d5   :  { %v796_v9 = vor.u32 1.1754944e-38, %v795_v6  ;;  %vm794_vm15 = vcmp.eq.f32.partialorder %v793_v7, 8.507059e+37 }
 0x5d9   :  { %v1373_v1 = vpop.eup %1372 }
 0x5da   :  { %v785_v2 = vmul.f32 %v1373_v1, %v783_v63  ;;  %vm790_vm12 = vweird.f32 %v1373_v1 }
 0x5db   :  { %vm791_vm14 = vmor %vm789_vm13, %vm790_vm12 }
 0x5dc   :  { %v786_v3 = vsub.f32 1.0, %v785_v2 }
 0x5de   :  { %v787_v4 = vmul.f32 %v1373_v1, %v786_v3 }
 0x5e0   :  { %v788_v5 = vadd.f32 %v1373_v1, %v787_v4 }
 0x5e2   :  { %v792_v41 = vsel %vm791_vm14, %v1373_v1, %v788_v5 }
 0x5e3   :  { %v797_v11 = vsel %vm794_vm15, %v796_v9, %v792_v41 }
 0x5e4   :  { %v800_v13 = vmul.f32 %v797_v11, %v747_v49 }
 0x641   :  { %v803_v10 = vpop.permute.xlu0 %802 }
 0x642   :  { %v805_v12 = vmul.f32 %v803_v10, %v797_v11 }
 0x644   :  { %807 = vrot.lane.b32.xlu1 %v805_v12, %s1662_s6 }
 0x6b6   :  { %v808_v14 = vpop.permute.xlu1 %807 }
 0x6b7   :  { %v810_v15 = vadd.f32 %v808_v14, %v800_v13 }
 0x6b9   :  { %1374 = vtanh.f32 %v810_v15 }
 0x6bf   :  { %v1375_v16 = vpop.eup %1374 }
 0x6c0   :  { %813 = vrot.lane.b32.xlu2 %v1375_v16, %s1653_s20 }
 0x71a   :  { %v814_v17 = vpop.permute.xlu2 %813 }
 0x71b   :  { %v816_v18 = vmul.f32 %v814_v17, %v797_v11 }
 0x71d   :  { %818 = vrot.lane.b32.xlu0 %v816_v18, %s1662_s6 }
 0x78f   :  { %v819_v19 = vpop.permute.xlu0 %818 }
 0x790   :  { %1316 = vmatmul.msk.f32.vlgmr.msra.gmra.mxu2 %vm629_vm7, %v819_v19 }
 0x813   :  { %v839_v20 = vpop.f32.mrf.mxu2 }
 0x814   :  { %v842_v21 = vadd.f32 %v839_v20, %v1834_v52 }
 0x816   :  { %1376 = vtanh.f32 %v842_v21  ;;  %v1317_v23 = vmul.f32 -1.442695, %v842_v21 }
 0x818   :  { %1378 = vpow2.f32 %v1317_v23 }
 0x81c   :  { %v1377_v22 = vpop.eup %1376 }
 0x81d   :  { %865 = vrot.lane.b32.xlu1 %v1377_v22, %s1653_s20 }
 0x81e   :  { %v1379_v24 = vpop.eup %1378 }
 0x81f   :  { %v846_v25 = vadd.f32 1.0, %v1379_v24 }
 0x821   :  { %1380 = vrcp.f32 %v846_v25  ;;  %v858_v31 = vand.u32 2147483648, %v846_v25  ;;  %vm852_vm1 = vweird.f32 %v846_v25  ;;  %v856_v32 = vand.u32 2147483647, %v846_v25 }
 0x823   :  { %v859_v33 = vor.u32 1.1754944e-38, %v858_v31  ;;  %vm857_vm3 = vcmp.eq.f32.partialorder %v856_v32, 8.507059e+37 }
 0x827   :  { %v1381_v26 = vpop.eup %1380 }
 0x828   :  { %v848_v27 = vmul.f32 %v1381_v26, %v846_v25  ;;  %vm853_vm0 = vweird.f32 %v1381_v26 }
 0x829   :  { %vm854_vm2 = vmor %vm852_vm1, %vm853_vm0 }
 0x82a   :  { %v849_v28 = vsub.f32 1.0, %v848_v27 }
 0x82c   :  { %v850_v29 = vmul.f32 %v1381_v26, %v849_v28 }
 0x82e   :  { %v851_v30 = vadd.f32 %v1381_v26, %v850_v29 }
 0x830   :  { %v855_v52 = vsel %vm854_vm2, %v1381_v26, %v851_v30 }
 0x831   :  { %v860_v35 = vsel %vm857_vm3, %v859_v33, %v855_v52 }
 0x832   :  { %v863_v37 = vmul.f32 %v860_v35, %v810_v15 }
 0x88f   :  { %v866_v34 = vpop.permute.xlu1 %865 }
 0x890   :  { %v868_v36 = vmul.f32 %v866_v34, %v860_v35 }
 0x892   :  { %870 = vrot.lane.b32.xlu2 %v868_v36, %s1662_s6 }
 0x8ec   :  { %v871_v38 = vpop.permute.xlu2 %870 }
 0x8ed   :  { %v873_v39 = vadd.f32 %v871_v38, %v863_v37 }
 0x8ef   :  { %1382 = vtanh.f32 %v873_v39 }
 0x8f5   :  { %v1383_v42 = vpop.eup %1382 }
 0x8f6   :  { %876 = vrot.lane.b32.xlu0 %v1383_v42, %s1653_s20 }
 0x968   :  { %v877_v40 = vpop.permute.xlu0 %876 }
 0x969   :  { %v879_v43 = vmul.f32 %v877_v40, %v860_v35 }
 0x96b   :  { %881 = vrot.lane.b32.xlu1 %v879_v43, %s1662_s6 }
 0x9dd   :  { %v882_v44 = vpop.permute.xlu1 %881 }
 0x9de   :  { %1318 = vmatmul.msk.f32.vlgmr.msra.gmra.mxu3 %vm629_vm7, %v882_v44 }
 0xa61   :  { %v902_v45 = vpop.f32.mrf.mxu3 }
 0xa62   :  { %v905_v46 = vadd.f32 %v902_v45, %v1840_v61 }
 0xa64   :  { %1384 = vtanh.f32 %v905_v46  ;;  %v1319_v48 = vmul.f32 -1.442695, %v905_v46 }
 0xa66   :  { %1386 = vpow2.f32 %v1319_v48 }
 0xa6a   :  { %v1385_v47 = vpop.eup %1384 }
 0xa6b   :  { %928 = vrot.lane.b32.xlu2 %v1385_v47, %s1653_s20 }
 0xa6c   :  { %v1387_v49 = vpop.eup %1386 }
 0xa6d   :  { %v909_v50 = vadd.f32 1.0, %v1387_v49 }
 0xa6f   :  { %1388 = vrcp.f32 %v909_v50  ;;  %v921_v59 = vand.u32 2147483648, %v909_v50  ;;  %vm915_vm5 = vweird.f32 %v909_v50  ;;  %v919_v60 = vand.u32 2147483647, %v909_v50 }
 0xa71   :  { %v922_v62 = vor.u32 1.1754944e-38, %v921_v59  ;;  %vm920_vm8 = vcmp.eq.f32.partialorder %v919_v60, 8.507059e+37 }
 0xa75   :  { %v1389_v51 = vpop.eup %1388 }
 0xa76   :  { %v911_v55 = vmul.f32 %v1389_v51, %v909_v50  ;;  %vm916_vm4 = vweird.f32 %v1389_v51 }
 0xa77   :  { %vm917_vm6 = vmor %vm915_vm5, %vm916_vm4 }
 0xa78   :  { %v912_v56 = vsub.f32 1.0, %v911_v55 }
 0xa7a   :  { %v913_v57 = vmul.f32 %v1389_v51, %v912_v56 }
 0xa7c   :  { %v914_v58 = vadd.f32 %v1389_v51, %v913_v57 }
 0xa7e   :  { %v918_v61 = vsel %vm917_vm6, %v1389_v51, %v914_v58 }
 0xa7f   :  { %v923_v1 = vsel %vm920_vm8, %v922_v62, %v918_v61  ;;  %vm1242_vm8 = vcmask 326656  }
 0xa80   :  { %v926_v3 = vmul.f32 %v923_v1, %v873_v39 }
 0xac5   :  { %v929_v63 = vpop.permute.xlu2 %928 }
 0xac6   :  { %v931_v2 = vmul.f32 %v929_v63, %v923_v1 }
 0xac8   :  { %933 = vrot.lane.b32.xlu0 %v931_v2, %s1662_s6 }
 0xb3a   :  { %v934_v4 = vpop.permute.xlu0 %933 }
 0xb3b   :  { %v936_v5 = vadd.f32 %v934_v4, %v926_v3  ;;  %v1139_v4 = vld [vmem:[#allocation13 + $0x18] sm:$0xff] }
 0xb3c   :  { %1156 = vmatpush.msrb.mxu3 %v1139_v4 }
 0xb3d   :  { %1390 = vtanh.f32 %v936_v5 }
 0xb43   :  { %v1391_v6 = vpop.eup %1390 }
 0xb44   :  { %939 = vrot.lane.b32.xlu1 %v1391_v6, %s1653_s20  ;;  %v1138_v6 = vld [vmem:[#allocation13 + $0x10] sm:$0xff] }
 0xb45   :  { %1157 = vmatpush.msrb.mxu3 %v1138_v6 }
 0xbb6   :  { %v940_v7 = vpop.permute.xlu1 %939 }
 0xbb7   :  { %v942_v41 = vmul.f32 %v940_v7, %v923_v1  ;;  %v1137_v7 = vld [vmem:[#allocation13 + $0x8] sm:$0xff] }
 0xbb8   :  { %1158 = vmatpush.msrb.mxu3 %v1137_v7 }
 0xbb9   :  { %944 = vrot.lane.b32.xlu2 %v942_v41, %s1662_s6  ;;  %v1136_v41 = vld [vmem:[#allocation13] sm:$0xff] }
 0xbba   :  { %1159 = vmatpush.msrb.mxu3 %v1136_v41 }
 0xc13   :  { %v945_v9 = vpop.permute.xlu2 %944 }
 0xc14   :  { %1320 = vmatmul.msk.f32.vlgmr.msra.gmra.mxu0 %vm629_vm7, %v945_v9  ;;  %v1218_v9 = vld [vmem:[%s1939_s11] sm:$0xff] }
 0xc91   :  { %v965_v10 = vpop.f32.mrf.mxu0 }
 0xc92   :  { %v968_v11 = vadd.f32 %v965_v10, %v1836_v53 }
 0xc94   :  { %1392 = vtanh.f32 %v968_v11  ;;  %v1321_v13 = vmul.f32 -1.442695, %v968_v11 }
 0xc96   :  { %1394 = vpow2.f32 %v1321_v13 }
 0xc9a   :  { %v1393_v12 = vpop.eup %1392 }
 0xc9b   :  { %991 = vrot.lane.b32.xlu0 %v1393_v12, %s1653_s20 }
 0xc9c   :  { %v1395_v14 = vpop.eup %1394 }
 0xc9d   :  { %v972_v15 = vadd.f32 1.0, %v1395_v14 }
 0xc9f   :  { %1396 = vrcp.f32 %v972_v15  ;;  %v984_v21 = vand.u32 2147483648, %v972_v15  ;;  %vm978_vm10 = vweird.f32 %v972_v15  ;;  %v982_v22 = vand.u32 2147483647, %v972_v15 }
 0xca1   :  { %v985_v23 = vor.u32 1.1754944e-38, %v984_v21  ;;  %vm983_vm12 = vcmp.eq.f32.partialorder %v982_v22, 8.507059e+37 }
 0xca5   :  { %v1397_v16 = vpop.eup %1396 }
 0xca6   :  { %v974_v17 = vmul.f32 %v1397_v16, %v972_v15  ;;  %vm979_vm9 = vweird.f32 %v1397_v16 }
 0xca7   :  { %vm980_vm11 = vmor %vm978_vm10, %vm979_vm9  ;;  %vm1271_vm10 = vcmask 97280  }
 0xca8   :  { %v975_v18 = vsub.f32 1.0, %v974_v17 }
 0xcaa   :  { %v976_v19 = vmul.f32 %v1397_v16, %v975_v18 }
 0xcac   :  { %v977_v20 = vadd.f32 %v1397_v16, %v976_v19 }
 0xcae   :  { %v981_v53 = vsel %vm980_vm11, %v1397_v16, %v977_v20 }
 0xcaf   :  { %v986_v25 = vsel %vm983_vm12, %v985_v23, %v981_v53 }
 0xcb0   :  { %v989_v27 = vmul.f32 %v986_v25, %v936_v5  ;;  %v1221_v5 = vld [vmem:[%s1939_s11 + $0x18] sm:$0xff] }
 0xcb1   :  { %1234 = vmatpush.msrb.mxu1 %v1221_v5 }
 0xd0d   :  { %v992_v24 = vpop.permute.xlu0 %991 }
 0xd0e   :  { %v994_v26 = vmul.f32 %v992_v24, %v986_v25 }
 0xd10   :  { %996 = vrot.lane.b32.xlu1 %v994_v26, %s1662_s6  ;;  %v1135_v26 = vld [vmem:[#allocation11 + $0x18] sm:$0xff] }
 0xd11   :  { %1181 = vmatpush.msrb.mxu0 %v1135_v26 }
 0xd82   :  { %v997_v28 = vpop.permute.xlu1 %996 }
 0xd83   :  { %v999_v29 = vadd.f32 %v997_v28, %v989_v27  ;;  %v1134_v27 = vld [vmem:[#allocation11 + $0x10] sm:$0xff]  ;;  %v1133_v28 = vld [vmem:[#allocation11 + $0x8] sm:$0xff] }
 0xd84   :  { %1182 = vmatpush.msrb.mxu0 %v1134_v27 }
 0xd85   :  { %1398 = vtanh.f32 %v999_v29 }
 0xd86   :  { %1183 = vmatpush.msrb.mxu0 %v1133_v28 }
 0xd8b   :  { %v1399_v30 = vpop.eup %1398 }
 0xd8c   :  { %1002 = vrot.lane.b32.xlu2 %v1399_v30, %s1653_s20 }
 0xde6   :  { %v1003_v31 = vpop.permute.xlu2 %1002 }
 0xde7   :  { %v1005_v32 = vmul.f32 %v1003_v31, %v986_v25 }
 0xde9   :  { %1007 = vrot.lane.b32.xlu0 %v1005_v32, %s1662_s6 }
 0xe5b   :  { %v1008_v52 = vpop.permute.xlu0 %1007 }
 0xe5c   :  { %1322 = vmatmul.msk.f32.vlgmr.msra.gmra.mxu1 %vm629_vm7, %v1008_v52  ;;  %v1217_v52 = vld [vmem:[%s1938_s10 + $0x20] sm:$0xff] }
 0xe5d   :  { %1257 = vmatpush.msra.mxu2 %v1217_v52 }
 0xed9   :  { %v1028_v33 = vpop.f32.mrf.mxu1 }
 0xeda   :  { %v1031_v34 = vadd.f32 %v1028_v33, %v1838_v54  ;;  %v1216_v33 = vld [vmem:[%s1938_s10 + $0x18] sm:$0xff] }
 0xedb   :  { %1258 = vmatpush.msra.mxu2 %v1216_v33 }
 0xedc   :  { %1400 = vtanh.f32 %v1031_v34  ;;  %v1323_v36 = vmul.f32 -1.442695, %v1031_v34  ;;  %v1215_v34 = vld [vmem:[%s1938_s10 + $0x10] sm:$0xff] }
 0xedd   :  { %1259 = vmatpush.msra.mxu2 %v1215_v34 }
 0xede   :  { %1402 = vpow2.f32 %v1323_v36  ;;  %v1213_v36 = vld [vmem:[%s1938_s10] sm:$0xff] }
 0xee2   :  { %v1401_v35 = vpop.eup %1400 }
 0xee3   :  { %1054 = vrot.lane.b32.xlu1 %v1401_v35, %s1653_s20  ;;  %v1214_v35 = vld [vmem:[%s1938_s10 + $0x8] sm:$0xff] }
 0xee4   :  { %v1403_v37 = vpop.eup %1402  ;;  %1260 = vmatpush.msra.mxu2 %v1214_v35 }
 0xee5   :  { %v1035_v38 = vadd.f32 1.0, %v1403_v37  ;;  %v1348_v37 = vld [vmem:[#allocation14] ss:$0 sm:$0xff] }
 0xee6   :  { %1261 = vmatpush.msra.mxu2 %v1213_v36 }
 0xee7   :  { %1404 = vrcp.f32 %v1035_v38  ;;  %v1047_v45 = vand.u32 2147483648, %v1035_v38  ;;  %vm1041_vm14 = vweird.f32 %v1035_v38  ;;  %v1045_v46 = vand.u32 2147483647, %v1035_v38 }
 0xee9   :  { %v1048_v47 = vor.u32 1.1754944e-38, %v1047_v45  ;;  %vm1046_vm0 = vcmp.eq.f32.partialorder %v1045_v46, 8.507059e+37 }
 0xeed   :  { %v1405_v39 = vpop.eup %1404 }
 0xeee   :  { %v1037_v42 = vmul.f32 %v1405_v39, %v1035_v38  ;;  %vm1042_vm13 = vweird.f32 %v1405_v39 }
 0xeef   :  { %vm1043_vm15 = vmor %vm1041_vm14, %vm1042_vm13 }
 0xef0   :  { %v1038_v40 = vsub.f32 1.0, %v1037_v42 }
 0xef2   :  { %v1039_v43 = vmul.f32 %v1405_v39, %v1038_v40 }
 0xef4   :  { %v1040_v44 = vadd.f32 %v1405_v39, %v1039_v43 }
 0xef6   :  { %v1044_v54 = vsel %vm1043_vm15, %v1405_v39, %v1040_v44 }
 0xef7   :  { %v1049_v49 = vsel %vm1046_vm0, %v1048_v47, %v1044_v54 }
 0xef8   :  { %v1052_v51 = vmul.f32 %v1049_v49, %v999_v29  ;;  %v1132_v29 = vld [vmem:[#allocation11] sm:$0xff] }
 0xef9   :  { %1184 = vmatpush.msrb.mxu0 %v1132_v29 }
 0xf55   :  { %v1055_v48 = vpop.permute.xlu1 %1054 }
 0xf56   :  { %v1057_v50 = vmul.f32 %v1055_v48, %v1049_v49 }
 0xf58   :  { %1059 = vrot.lane.b32.xlu2 %v1057_v50, %s1662_s6 }
 0xfb2   :  { %v1060_v55 = vpop.permute.xlu2 %1059 }
 0xfb3   :  { %v1062_v56 = vadd.f32 %v1060_v55, %v1052_v51 }
 0xfb5   :  { %1406 = vtanh.f32 %v1062_v56 }
 0xfbb   :  { %v1407_v57 = vpop.eup %1406 }
 0xfbc   :  { %1065 = vrot.lane.b32.xlu0 %v1407_v57, %s1653_s20 }
0x102e   :  { %v1066_v58 = vpop.permute.xlu0 %1065 }
0x102f   :  { %v1068_v59 = vmul.f32 %v1066_v58, %v1049_v49  ;;  %v1349_v58 = vld [vmem:[%s1940_s12] ss:$0 sm:$0xff] }
0x1031   :  { %1070 = vrot.lane.b32.xlu1 %v1068_v59, %s1662_s6 }
0x10a3   :  { %v1071_v60 = vpop.permute.xlu1 %1070 }
0x10a4   :  { %1324 = vmatmul.msk.f32.vlgmr.msrb.gmra.mxu2 %vm629_vm7, %v1071_v60 }
0x1127   :  { %v1091_v61 = vpop.f32.mrf.mxu2 }
0x1128   :  { %v1094_v62 = vadd.f32 %v1091_v61, %v1842_v0  ;;  %v1220_v0 = vld [vmem:[%s1939_s11 + $0x10] sm:$0xff] }
0x1129   :  { %1235 = vmatpush.msrb.mxu1 %v1220_v0 }
0x112a   :  { %1408 = vtanh.f32 %v1094_v62  ;;  %v1325_v1 = vmul.f32 -1.442695, %v1094_v62 }
0x112c   :  { %1410 = vpow2.f32 %v1325_v1 }
0x1130   :  { %v1409_v63 = vpop.eup %1408 }
0x1131   :  { %1117 = vrot.lane.b32.xlu2 %v1409_v63, %s1653_s20 }
0x1132   :  { %v1411_v2 = vpop.eup %1410 }
0x1133   :  { %v1098_v3 = vadd.f32 1.0, %v1411_v2 }
0x1135   :  { %1412 = vrcp.f32 %v1098_v3  ;;  %v1110_v15 = vand.u32 2147483648, %v1098_v3  ;;  %vm1104_vm2 = vweird.f32 %v1098_v3  ;;  %v1108_v16 = vand.u32 2147483647, %v1098_v3 }
0x1137   :  { %v1111_v18 = vor.u32 1.1754944e-38, %v1110_v15  ;;  %vm1109_vm4 = vcmp.eq.f32.partialorder %v1108_v16, 8.507059e+37 }
0x1139   :  { %1140 = vrot.lane.b32.xlu2 %v1800_v8, %s1653_s20  ;;  %v1219_v8 = vld [vmem:[%s1939_s11 + $0x8] sm:$0xff] }
0x113a   :  { %1236 = vmatpush.msrb.mxu1 %v1219_v8 }
0x113b   :  { %v1413_v10 = vpop.eup %1412 }
0x113c   :  { %1237 = vmatpush.msrb.mxu1 %v1218_v9  ;;  %v1100_v11 = vmul.f32 %v1413_v10, %v1098_v3  ;;  %vm1105_vm1 = vweird.f32 %v1413_v10 }
0x113d   :  { %vm1106_vm3 = vmor %vm1104_vm2, %vm1105_vm1 }
0x113e   :  { %v1101_v12 = vsub.f32 1.0, %v1100_v11 }
0x1140   :  { %v1102_v13 = vmul.f32 %v1413_v10, %v1101_v12 }
0x1142   :  { %v1103_v14 = vadd.f32 %v1413_v10, %v1102_v13 }
0x1144   :  { %v1107_v17 = vsel %vm1106_vm3, %v1413_v10, %v1103_v14 }
0x1145   :  { %v1112_v20 = vsel %vm1109_vm4, %v1111_v18, %v1107_v17 }
0x1146   :  { %v1115_v53 = vmul.f32 %v1112_v20, %v1062_v56 }
0x118b   :  { %v1118_v19 = vpop.permute.xlu2 %1117 }
0x118c   :  { %v1120_v21 = vmul.f32 %v1118_v19, %v1112_v20 }
0x118e   :  { %1122 = vrot.lane.b32.xlu0 %v1120_v21, %s1662_s6 }
0x1193   :  { %v1141_v22 = vpop.permute.xlu2 %1140 }
0x1194   :  { %1326 = vmatmul.msk.f32.vlgmr.msrb.gmra.mxu3 %vm629_vm7, %v1141_v22  ;;  %1329 = vmatmul.msk.f32.vlgmr.msrb.gmra.mxu1 %vm629_vm7, %v1141_v22 }
0x1200   :  { %v1123_v23 = vpop.permute.xlu0 %1122 }
0x1201   :  { %v1125_v24 = vadd.f32 %v1123_v23, %v1115_v53 }
0x1203   :  { %1414 = vtanh.f32 %v1125_v24 }
0x1209   :  { %v1415_v25 = vpop.eup %1414 }
0x120a   :  { %1128 = vrot.lane.b32.xlu1 %v1415_v25, %s1653_s20 }
0x1211   :  { %v1239_v59 = vpop.f32.mrf.mxu1 }
0x1217   :  { %v1161_v38 = vpop.f32.mrf.mxu3 }
0x127c   :  { %v1129_v30 = vpop.permute.xlu1 %1128 }
0x127d   :  { %v1131_v31 = vmul.f32 %v1129_v30, %v1112_v20 }
0x127f   :  { %1165 = vrot.lane.b32.xlu0 %v1131_v31, %s1662_s6 }
0x12f1   :  { %v1166_v32 = vpop.permute.xlu0 %1165 }
0x12f2   :  { %1327 = vmatmul.msk.f32.vlgmr.msrb.gmra.mxu0 %vm629_vm7, %v1166_v32 }
0x136f   :  { %v1186_v39 = vpop.f32.mrf.mxu0 }
0x1370   :  { %v1187_v42 = vadd.f32 %v1186_v39, %v1161_v38 }
0x1372   :  { %v1193_v40 = vadd.f32 %v1348_v37, %v1187_v42 }
0x1374   :  { %v1328_v43 = vmul.f32 -1.442695, %v1193_v40 }
0x1376   :  { %1416 = vpow2.f32 %v1328_v43 }
0x137c   :  { %v1417_v44 = vpop.eup %1416 }
0x137d   :  { %v1197_v45 = vadd.f32 1.0, %v1417_v44 }
0x137f   :  { %1418 = vrcp.f32 %v1197_v45  ;;  %v1209_v48 = vand.u32 2147483648, %v1197_v45  ;;  %v1207_v50 = vand.u32 2147483647, %v1197_v45  ;;  %vm1203_vm5 = vweird.f32 %v1197_v45 }
0x1381   :  { %v1210_v55 = vor.u32 1.1754944e-38, %v1209_v48  ;;  %vm1208_vm9 = vcmp.eq.f32.partialorder %v1207_v50, 8.507059e+37 }
0x1385   :  { %v1419_v46 = vpop.eup %1418 }
0x1386   :  { %v1199_v54 = vmul.f32 %v1419_v46, %v1197_v45  ;;  %vm1204_vm7 = vweird.f32 %v1419_v46 }
0x1387   :  { %vm1205_vm6 = vmor %vm1203_vm5, %vm1204_vm7 }
0x1388   :  { %v1200_v47 = vsub.f32 1.0, %v1199_v54 }
0x138a   :  { %v1201_v49 = vmul.f32 %v1419_v46, %v1200_v47 }
0x138c   :  { %v1202_v51 = vadd.f32 %v1419_v46, %v1201_v49 }
0x138e   :  { %v1206_v56 = vsel %vm1205_vm6, %v1419_v46, %v1202_v51 }
0x138f   :  { %v1211_v57 = vsel %vm1208_vm9, %v1210_v55, %v1206_v56 }
0x1390   :  { %1330 = vmatmul.msk.f32.vlgmr.msra.gmra.mxu2 %vm1242_vm8, %v1211_v57 }
0x1413   :  { %v1263_v60 = vpop.f32.mrf.mxu2 }
0x1414   :  { %v1264_v61 = vadd.f32 %v1263_v60, %v1239_v59 }
0x1416   :  { %v1270_v62 = vadd.f32 %v1349_v58, %v1264_v61 }
0x1418   :  { %1272 = vst.msk [vmem:[#allocation16] sm:$0xff] %vm1271_vm10, %v1270_v62 }
0x1419   :  { %1283 = dma.vmem_to_hbm [thread:$0]  %s1279_s2, 128, %s1281_s27, [#allocation4]  }
0x141a   :  { %1646 = dma.done.wait [#allocation4], 128  }
0x141b   :  { %1647 = vsyncadd [#allocation4], 4294967168 }
0x141c   :  { %1288 = vsyncpa [#allocation3], 1 }
0x141d   :  { %1289 = vsyncpa [#allocation6], 1 }
0x141e   :  { %1290 = vsyncpa [#allocation9], 1 }
0x141f   :  { %1291 = vsyncpa [#allocation12], 1 }
0x1420   :  { %1292 = vsyncpa [#allocation15], 1 }
0x1421   :  { %1293 = vsyncpa [#allocation4], 1 }

</bundles_post_ra>
